<compile_context>
chip_gen: v7x
topology: tpu7x:2x2x1
jax: 0.10.0
libtpu: 0.0.40
codegen_flags: <defaults>
</compile_context>

<pallas_src>
import functools
import math

import jax
import jax.numpy as jnp
from jax.experimental import pallas as pl
from jax.experimental.pallas import tpu as pltpu


# ------------------------------ Pallas kernel -------------------------------

def _flatten_rows(a):
    """(L, L) -> (1, L*L) row-major flatten via lane-axis concatenation.

    Avoids an in-register sublane->lane reshape relayout; only static row
    slices and a last-axis concatenate (both cheap and always supported).
    """
    return jnp.concatenate([a[i:i + 1, :] for i in range(a.shape[0])], axis=1)


def _fused_dac_kernel(x_ref, w_ref, b_ref, series_ref, prior_ref, *,
                      n_heads, channel, batch, l_ps, l_pn):
    """Single-step kernel: fused q/k projection + per-head attention maps +
    channel mean for BOTH patch views.

    x_ref:      (rows_pad, D) bf16 -- stacked rows: [all patch-size rows of
                every (batch,channel) element ; all patch-num rows], zero-padded
                to a sublane multiple of 8.
    w_ref:      (D, 2*H*E) bf16 -- fused [W_query | W_key].
    b_ref:      (1, 2*H*E) f32  -- fused [b_query | b_key].
    series_ref: (batch, H*Lp*Lp) f32 -- flat channel-mean softmax maps.
    prior_ref:  (batch, H*Ln*Ln) f32.
    """
    H, C, B = n_heads, channel, batch
    e2 = w_ref.shape[1]
    E = e2 // (2 * H)
    beff = B * C
    inv_c = 1.0 / C
    scale = 1.0 / math.sqrt(E)

    # (1) One fused [Wq|Wk] projection for every row of both views
    #     (single MXU matmul, M = beff*(Lp+Ln)); bias added once.
    qk = jnp.dot(x_ref[...], w_ref[...], preferred_element_type=jnp.float32)
    qk = qk + b_ref[...]                                   # (rows_pad, 2*H*E)

    def emit_view(row0, L, out_ref):
        n = beff * L
        qk_v = qk[row0:row0 + n, :]                        # (n, 2*H*E) f32

        # (2) One stacked QK^T per head: (n,E) x (E,n) on the MXU instead of
        #     beff micro-matmuls with M=N=4..8.  Off-diagonal blocks are
        #     wasted-but-negligible FLOPs at these sizes.
        s_heads = []
        for h in range(H):
            q = qk_v[:, h * E:(h + 1) * E].astype(jnp.bfloat16)
            k = qk_v[:, (H + h) * E:(H + h + 1) * E].astype(jnp.bfloat16)
            s = jnp.einsum("le,se->ls", q, k,
                           preferred_element_type=jnp.float32) * scale
            s_heads.append(s)                              # (n, n) f32

        # (3) Per (batch, channel) diagonal block: f32 softmax, then channel
        #     mean; assemble a lane-dense flat row per batch element.
        out_rows = []
        for b in range(B):
            head_pieces = []
            for h in range(H):
                s = s_heads[h]
                acc = jnp.zeros((L, L), jnp.float32)
                for c in range(C):
                    r0 = (b * C + c) * L
                    blk = s[r0:r0 + L, r0:r0 + L]
                    m = jnp.max(blk, axis=-1, keepdims=True)
                    p = jnp.exp(blk - m)
                    # exact EUP reciprocal (rows must sum to 1 for the
                    # downstream KL between series and prior).
                    p = p * pl.reciprocal(jnp.sum(p, axis=-1, keepdims=True),
                                          approx=False)
                    acc = acc + p
                head_pieces.append(_flatten_rows(acc * inv_c))   # (1, L*L)
            out_rows.append(jnp.concatenate(head_pieces, axis=1))
        out_ref[...] = jnp.concatenate(out_rows, axis=0)         # (B, H*L*L)

    emit_view(0, l_ps, series_ref)
    emit_view(beff * l_ps, l_pn, prior_ref)

    # TODO(synk): for large channel counts, add a channel-tiled grid axis
    # ("arbitrary") with VMEM scratch accumulators and pl.when init/finalize,
    # sized against v7x's 64 MiB VMEM; and on v7x shard a batch axis across
    # the two TensorCores (CORE_PARALLEL) instead of collapsing the grid.


def fused_dac_attention(x_ps, x_pn, w_qk_bf16, b_qk, *, n_heads, channel):
    """Channel-averaged pre-upsample attention maps for both patch views.

    x_ps: (batch*channel, Lp, D), x_pn: (batch*channel, Ln, D)
    Returns ((batch, H, Lp, Lp), (batch, H, Ln, Ln)), f32.
    """
    beff, l_ps, d = x_ps.shape
    l_pn = x_pn.shape[1]
    assert beff % channel == 0
    batch = beff // channel
    e2 = w_qk_bf16.shape[1]

    # Stack both views' rows into a single (rows, D) bf16 operand so the
    # kernel runs ONE fused projection matmul; pad rows to a multiple of 8.
    x_all = jnp.concatenate(
        [x_ps.reshape(beff * l_ps, d), x_pn.reshape(beff * l_pn, d)],
        axis=0).astype(jnp.bfloat16)
    rows = x_all.shape[0]
    rows_pad = -(-rows // 8) * 8
    if rows_pad != rows:
        x_all = jnp.pad(x_all, ((0, rows_pad - rows), (0, 0)))

    kernel = functools.partial(_fused_dac_kernel, n_heads=n_heads,
                               channel=channel, batch=batch,
                               l_ps=l_ps, l_pn=l_pn)
    series_flat, prior_flat = pl.pallas_call(
        kernel,
        out_shape=(
            jax.ShapeDtypeStruct((batch, n_heads * l_ps * l_ps), jnp.float32),
            jax.ShapeDtypeStruct((batch, n_heads * l_pn * l_pn), jnp.float32),
        ),
        grid=(1,),  # single step: avoids per-grid-step overhead on 1-TC chips
        in_specs=[
            pl.BlockSpec((rows_pad, d), lambda i: (0, 0)),
            pl.BlockSpec((d, e2), lambda i: (0, 0)),
            pl.BlockSpec((1, e2), lambda i: (0, 0)),
        ],
        out_specs=[
            pl.BlockSpec((batch, n_heads * l_ps * l_ps), lambda i: (0, 0)),
            pl.BlockSpec((batch, n_heads * l_pn * l_pn), lambda i: (0, 0)),
        ],
        compiler_params=pltpu.CompilerParams(
            dimension_semantics=("arbitrary",)),
    )(x_all, w_qk_bf16, b_qk.reshape(1, e2))

    series_small = series_flat.reshape(batch, n_heads, l_ps, l_ps)
    prior_small = prior_flat.reshape(batch, n_heads, l_pn, l_pn)
    return series_small, prior_small


# --------------------------- parameter creation ------------------------------

def init_params(key, d_model, n_heads):
    d_keys = d_model // n_heads
    d_values = d_model // n_heads
    ks = jax.random.split(key, 4)

    def lin(k, din, dout):
        kw, kb = jax.random.split(k)
        bound = 1.0 / math.sqrt(din)  # PyTorch default nn.Linear init range
        w = jax.random.uniform(kw, (din, dout), jnp.float32, -bound, bound)
        b = jax.random.uniform(kb, (dout,), jnp.float32, -bound, bound)
        return w, b

    return {
        "patch_query": lin(ks[0], d_model, d_keys * n_heads),
        "patch_key": lin(ks[1], d_model, d_keys * n_heads),
        # Present in the PyTorch module but never affect forward's outputs:
        "value": lin(ks[2], d_model, d_values * n_heads),   # result unused
        "out": lin(ks[3], d_values * n_heads, d_model),     # never called
        # self.norm (LayerNorm) also never called in forward; omitted.
    }


# ------------------------------- forward pass --------------------------------

def attention_layer_forward(params, x_patch_size, x_patch_num, x_ori,
                            patch_index, patch_list, n_heads, win_size,
                            channel, attn_mask=None):
    # attn_mask is accepted but ignored (DAC_structure never applies it).
    # The value projection on x_ori is dead compute in the original forward
    # (its result is never consumed), so it is skipped entirely here.
    del x_ori, attn_mask

    wq, bq = params["patch_query"]
    wk, bk = params["patch_key"]
    # Fused [Wq | Wk], pre-cast to bf16 once in the wrapper (halves weight
    # DMA into the kernel and removes the in-kernel cast); bias stays f32.
    w_qk = jnp.concatenate([wq, wk], axis=1).astype(jnp.bfloat16)
    b_qk = jnp.concatenate([bq, bk], axis=0).astype(jnp.float32)

    series_small, prior_small = fused_dac_attention(
        x_patch_size, x_patch_num, w_qk, b_qk,
        n_heads=n_heads, channel=channel)

    p = patch_list[patch_index]
    r = win_size // p
    # Upsample the (already channel-averaged) small maps to win_size:
    #   series: einops repeat '.. (m rm) (n rn)' == element-wise repeat
    #   prior:  torch .repeat(1,1,r,r)           == tile
    series = jnp.repeat(jnp.repeat(series_small, p, axis=2), p, axis=3)
    prior = jnp.tile(prior_small, (1, 1, r, r))
    return series, prior


# ----------------------- pure-JAX reference (original order) -----------------

def _reference_forward(params, x_patch_size, x_patch_num, patch_index,
                       patch_list, n_heads, win_size, channel):
    H = n_heads

    def attn_maps(x):
        beff, L, _ = x.shape
        wq, bq = params["patch_query"]
        wk, bk = params["patch_key"]
        q = (x @ wq + bq).reshape(beff, L, H, -1)
        k = (x @ wk + bk).reshape(beff, L, H, -1)
        E = q.shape[-1]
        s = jnp.einsum("blhe,bshe->bhls", q, k) * (1.0 / math.sqrt(E))
        return jax.nn.softmax(s, axis=-1)           # (beff, H, L, L)

    a_ps = attn_maps(x_patch_size)
    a_pn = attn_maps(x_patch_num)
    p = patch_list[patch_index]
    r = win_size // p
    series = jnp.repeat(jnp.repeat(a_ps, p, axis=2), p, axis=3)
    prior = jnp.tile(a_pn, (1, 1, r, r))
    batch = x_patch_size.shape[0] // channel
    series = series.reshape(batch, channel, H, win_size, win_size).mean(axis=1)
    prior = prior.reshape(batch, channel, H, win_size, win_size).mean(axis=1)
    return series, prior


# ----------------------------------- main -------------------------------------

if __name__ == "__main__":
    # Small config consistent with DCdetector: d_model=256 (its default);
    # n_heads=2 so the per-head width E=128 is lane-tile aligned on TPU.
    d_model, n_heads = 256, 2
    win_size, patch = 32, 8
    channel, batch = 3, 2
    patch_num = win_size // patch          # 4
    beff = batch * channel                 # 6 (batch-major, channel-minor)

    key = jax.random.PRNGKey(0)
    kp, k1, k2, k3 = jax.random.split(key, 4)
    params = init_params(kp, d_model, n_heads)

    x_patch_size = jax.random.normal(k1, (beff, patch_num, d_model), jnp.float32)
    x_patch_num = jax.random.normal(k2, (beff, patch, d_model), jnp.float32)
    x_ori = jax.random.normal(k3, (beff, win_size, d_model), jnp.float32)

    series, prior = attention_layer_forward(
        params, x_patch_size, x_patch_num, x_ori,
        patch_index=0, patch_list=[patch], n_heads=n_heads,
        win_size=win_size, channel=channel, attn_mask=None)
    jax.block_until_ready((series, prior))

    assert series.shape == (batch, n_heads, win_size, win_size)
    assert prior.shape == (batch, n_heads, win_size, win_size)

    # f32 reference of the original (mean-after-upsample) forward; the kernel
    # uses bf16 MXU operands with f32 accumulation, so compare loosely.
    series_ref, prior_ref = _reference_forward(
        params, x_patch_size, x_patch_num, patch_index=0, patch_list=[patch],
        n_heads=n_heads, win_size=win_size, channel=channel)
    assert jnp.allclose(series, series_ref, atol=2e-2, rtol=2e-2), float(
        jnp.max(jnp.abs(series - series_ref)))
    assert jnp.allclose(prior, prior_ref, atol=2e-2, rtol=2e-2), float(
        jnp.max(jnp.abs(prior - prior_ref)))

    print("KERNEL_OK")
</pallas_src>

<mosaic_0001>
module attributes {stable_mosaic.version = 11 : i64} {
  func.func @_fused_dac_kernel(%arg0: i32, %arg1: memref<72x256xbf16, #tpu.memory_space<vmem>>, %arg2: memref<256x512xbf16, #tpu.memory_space<vmem>>, %arg3: memref<1x512xf32, #tpu.memory_space<vmem>>, %arg4: memref<2x32xf32, #tpu.memory_space<vmem>>, %arg5: memref<2x128xf32, #tpu.memory_space<vmem>>) attributes {dimension_semantics = [#tpu.dimension_semantics<arbitrary>], iteration_bounds = array<i64: 1>, scalar_prefetch = 0 : i64, scratch_operands = 0 : i64, tpu.core_type = #tpu.core_type<tc>, window_params = [{pipeline_mode = #tpu.pipeline_mode<synchronous>, transform_indices = @transform_0, window_bounds = array<i64: 72, 256>}, {pipeline_mode = #tpu.pipeline_mode<synchronous>, transform_indices = @transform_1, window_bounds = array<i64: 256, 512>}, {pipeline_mode = #tpu.pipeline_mode<synchronous>, transform_indices = @transform_2, window_bounds = array<i64: 1, 512>}, {pipeline_mode = #tpu.pipeline_mode<synchronous>, transform_indices = @transform_3, window_bounds = array<i64: 2, 32>}, {pipeline_mode = #tpu.pipeline_mode<synchronous>, transform_indices = @transform_4, window_bounds = array<i64: 2, 128>}]} {
    %c0 = arith.constant 0 : index
    %c0_0 = arith.constant 0 : index
    %0 = vector.load %arg1[%c0, %c0_0] : memref<72x256xbf16, #tpu.memory_space<vmem>>, vector<72x256xbf16>
    %c0_1 = arith.constant 0 : index
    %c0_2 = arith.constant 0 : index
    %1 = vector.load %arg2[%c0_1, %c0_2] : memref<256x512xbf16, #tpu.memory_space<vmem>>, vector<256x512xbf16>
    %cst = arith.constant dense<0.000000e+00> : vector<72x512xf32>
    %2 = tpu.matmul %0, %1, %cst {dimension_numbers = #tpu.dot_dimension_numbers<[1], [0], [0], [1], [0, 0, 1, 1], [], []>} : vector<72x256xbf16>, vector<256x512xbf16>, vector<72x512xf32> -> vector<72x512xf32>
    %c0_3 = arith.constant 0 : index
    %c0_4 = arith.constant 0 : index
    %3 = vector.load %arg3[%c0_3, %c0_4] : memref<1x512xf32, #tpu.memory_space<vmem>>, vector<1x512xf32>
    %4 = vector.broadcast %3 : vector<1x512xf32> to vector<72x512xf32>
    %5 = arith.addf %2, %4 : vector<72x512xf32>
    %6 = vector.extract_strided_slice %5 {offsets = [0, 0], sizes = [24, 512], strides = [1, 1]} : vector<72x512xf32> to vector<24x512xf32>
    %7 = vector.extract_strided_slice %6 {offsets = [0, 0], sizes = [24, 128], strides = [1, 1]} : vector<24x512xf32> to vector<24x128xf32>
    %8 = arith.truncf %7 : vector<24x128xf32> to vector<24x128xbf16>
    %9 = vector.extract_strided_slice %6 {offsets = [0, 256], sizes = [24, 128], strides = [1, 1]} : vector<24x512xf32> to vector<24x128xf32>
    %10 = arith.truncf %9 : vector<24x128xf32> to vector<24x128xbf16>
    "tpu.trace_start"() <{level = 10 : i32, message = "le,se->ls"}> : () -> ()
    %cst_5 = arith.constant dense<0.000000e+00> : vector<24x24xf32>
    %11 = tpu.matmul %8, %10, %cst_5 {dimension_numbers = #tpu.dot_dimension_numbers<[1], [1], [0], [0], [0, 0, 1, 0], [], []>} : vector<24x128xbf16>, vector<24x128xbf16>, vector<24x24xf32> -> vector<24x24xf32>
    "tpu.trace_stop"() : () -> ()
    %cst_6 = arith.constant 0.0883883461 : f32
    %12 = vector.broadcast %cst_6 : f32 to vector<24x24xf32>
    %13 = arith.mulf %11, %12 : vector<24x24xf32>
    %14 = vector.extract_strided_slice %6 {offsets = [0, 128], sizes = [24, 128], strides = [1, 1]} : vector<24x512xf32> to vector<24x128xf32>
    %15 = arith.truncf %14 : vector<24x128xf32> to vector<24x128xbf16>
    %16 = vector.extract_strided_slice %6 {offsets = [0, 384], sizes = [24, 128], strides = [1, 1]} : vector<24x512xf32> to vector<24x128xf32>
    %17 = arith.truncf %16 : vector<24x128xf32> to vector<24x128xbf16>
    "tpu.trace_start"() <{level = 10 : i32, message = "le,se->ls"}> : () -> ()
    %cst_7 = arith.constant dense<0.000000e+00> : vector<24x24xf32>
    %18 = tpu.matmul %15, %17, %cst_7 {dimension_numbers = #tpu.dot_dimension_numbers<[1], [1], [0], [0], [0, 0, 1, 0], [], []>} : vector<24x128xbf16>, vector<24x128xbf16>, vector<24x24xf32> -> vector<24x24xf32>
    "tpu.trace_stop"() : () -> ()
    %cst_8 = arith.constant 0.0883883461 : f32
    %19 = vector.broadcast %cst_8 : f32 to vector<24x24xf32>
    %20 = arith.mulf %18, %19 : vector<24x24xf32>
    %cst_9 = arith.constant 0.000000e+00 : f32
    %21 = vector.broadcast %cst_9 : f32 to vector<4x4xf32>
    %22 = vector.extract_strided_slice %13 {offsets = [0, 0], sizes = [4, 4], strides = [1, 1]} : vector<24x24xf32> to vector<4x4xf32>
    %cst_10 = arith.constant dense<0xFF800000> : vector<4xf32>
    %23 = vector.multi_reduction <maximumf>, %22, %cst_10 [1] : vector<4x4xf32> to vector<4xf32>
    %24 = vector.shape_cast %23 : vector<4xf32> to vector<4x1xf32>
    %25 = vector.broadcast %24 : vector<4x1xf32> to vector<4x4xf32>
    %26 = arith.subf %22, %25 : vector<4x4xf32>
    %27 = math.exp %26 : vector<4x4xf32>
    %cst_11 = arith.constant dense<0.000000e+00> : vector<4xf32>
    %28 = vector.multi_reduction <add>, %27, %cst_11 [1] : vector<4x4xf32> to vector<4xf32>
    %29 = vector.shape_cast %28 : vector<4xf32> to vector<4x1xf32>
    %30 = tpu.reciprocal %29 : vector<4x1xf32> -> vector<4x1xf32>
    %31 = vector.broadcast %30 : vector<4x1xf32> to vector<4x4xf32>
    %32 = arith.mulf %27, %31 : vector<4x4xf32>
    %33 = arith.addf %21, %32 : vector<4x4xf32>
    %34 = vector.extract_strided_slice %13 {offsets = [4, 4], sizes = [4, 4], strides = [1, 1]} : vector<24x24xf32> to vector<4x4xf32>
    %cst_12 = arith.constant dense<0xFF800000> : vector<4xf32>
    %35 = vector.multi_reduction <maximumf>, %34, %cst_12 [1] : vector<4x4xf32> to vector<4xf32>
    %36 = vector.shape_cast %35 : vector<4xf32> to vector<4x1xf32>
    %37 = vector.broadcast %36 : vector<4x1xf32> to vector<4x4xf32>
    %38 = arith.subf %34, %37 : vector<4x4xf32>
    %39 = math.exp %38 : vector<4x4xf32>
    %cst_13 = arith.constant dense<0.000000e+00> : vector<4xf32>
    %40 = vector.multi_reduction <add>, %39, %cst_13 [1] : vector<4x4xf32> to vector<4xf32>
    %41 = vector.shape_cast %40 : vector<4xf32> to vector<4x1xf32>
    %42 = tpu.reciprocal %41 : vector<4x1xf32> -> vector<4x1xf32>
    %43 = vector.broadcast %42 : vector<4x1xf32> to vector<4x4xf32>
    %44 = arith.mulf %39, %43 : vector<4x4xf32>
    %45 = arith.addf %33, %44 : vector<4x4xf32>
    %46 = vector.extract_strided_slice %13 {offsets = [8, 8], sizes = [4, 4], strides = [1, 1]} : vector<24x24xf32> to vector<4x4xf32>
    %cst_14 = arith.constant dense<0xFF800000> : vector<4xf32>
    %47 = vector.multi_reduction <maximumf>, %46, %cst_14 [1] : vector<4x4xf32> to vector<4xf32>
    %48 = vector.shape_cast %47 : vector<4xf32> to vector<4x1xf32>
    %49 = vector.broadcast %48 : vector<4x1xf32> to vector<4x4xf32>
    %50 = arith.subf %46, %49 : vector<4x4xf32>
    %51 = math.exp %50 : vector<4x4xf32>
    %cst_15 = arith.constant dense<0.000000e+00> : vector<4xf32>
    %52 = vector.multi_reduction <add>, %51, %cst_15 [1] : vector<4x4xf32> to vector<4xf32>
    %53 = vector.shape_cast %52 : vector<4xf32> to vector<4x1xf32>
    %54 = tpu.reciprocal %53 : vector<4x1xf32> -> vector<4x1xf32>
    %55 = vector.broadcast %54 : vector<4x1xf32> to vector<4x4xf32>
    %56 = arith.mulf %51, %55 : vector<4x4xf32>
    %57 = arith.addf %45, %56 : vector<4x4xf32>
    %cst_16 = arith.constant 0.333333343 : f32
    %58 = vector.broadcast %cst_16 : f32 to vector<4x4xf32>
    %59 = arith.mulf %57, %58 : vector<4x4xf32>
    %60 = vector.extract_strided_slice %59 {offsets = [0, 0], sizes = [1, 4], strides = [1, 1]} : vector<4x4xf32> to vector<1x4xf32>
    %61 = vector.extract_strided_slice %59 {offsets = [1, 0], sizes = [1, 4], strides = [1, 1]} : vector<4x4xf32> to vector<1x4xf32>
    %62 = vector.extract_strided_slice %59 {offsets = [2, 0], sizes = [1, 4], strides = [1, 1]} : vector<4x4xf32> to vector<1x4xf32>
    %63 = vector.extract_strided_slice %59 {offsets = [3, 0], sizes = [1, 4], strides = [1, 1]} : vector<4x4xf32> to vector<1x4xf32>
    %64 = tpu.concatenate %60, %61, %62, %63 in 1 : vector<1x4xf32>, vector<1x4xf32>, vector<1x4xf32>, vector<1x4xf32> -> vector<1x16xf32>
    %cst_17 = arith.constant 0.000000e+00 : f32
    %65 = vector.broadcast %cst_17 : f32 to vector<4x4xf32>
    %66 = vector.extract_strided_slice %20 {offsets = [0, 0], sizes = [4, 4], strides = [1, 1]} : vector<24x24xf32> to vector<4x4xf32>
    %cst_18 = arith.constant dense<0xFF800000> : vector<4xf32>
    %67 = vector.multi_reduction <maximumf>, %66, %cst_18 [1] : vector<4x4xf32> to vector<4xf32>
    %68 = vector.shape_cast %67 : vector<4xf32> to vector<4x1xf32>
    %69 = vector.broadcast %68 : vector<4x1xf32> to vector<4x4xf32>
    %70 = arith.subf %66, %69 : vector<4x4xf32>
    %71 = math.exp %70 : vector<4x4xf32>
    %cst_19 = arith.constant dense<0.000000e+00> : vector<4xf32>
    %72 = vector.multi_reduction <add>, %71, %cst_19 [1] : vector<4x4xf32> to vector<4xf32>
    %73 = vector.shape_cast %72 : vector<4xf32> to vector<4x1xf32>
    %74 = tpu.reciprocal %73 : vector<4x1xf32> -> vector<4x1xf32>
    %75 = vector.broadcast %74 : vector<4x1xf32> to vector<4x4xf32>
    %76 = arith.mulf %71, %75 : vector<4x4xf32>
    %77 = arith.addf %65, %76 : vector<4x4xf32>
    %78 = vector.extract_strided_slice %20 {offsets = [4, 4], sizes = [4, 4], strides = [1, 1]} : vector<24x24xf32> to vector<4x4xf32>
    %cst_20 = arith.constant dense<0xFF800000> : vector<4xf32>
    %79 = vector.multi_reduction <maximumf>, %78, %cst_20 [1] : vector<4x4xf32> to vector<4xf32>
    %80 = vector.shape_cast %79 : vector<4xf32> to vector<4x1xf32>
    %81 = vector.broadcast %80 : vector<4x1xf32> to vector<4x4xf32>
    %82 = arith.subf %78, %81 : vector<4x4xf32>
    %83 = math.exp %82 : vector<4x4xf32>
    %cst_21 = arith.constant dense<0.000000e+00> : vector<4xf32>
    %84 = vector.multi_reduction <add>, %83, %cst_21 [1] : vector<4x4xf32> to vector<4xf32>
    %85 = vector.shape_cast %84 : vector<4xf32> to vector<4x1xf32>
    %86 = tpu.reciprocal %85 : vector<4x1xf32> -> vector<4x1xf32>
    %87 = vector.broadcast %86 : vector<4x1xf32> to vector<4x4xf32>
    %88 = arith.mulf %83, %87 : vector<4x4xf32>
    %89 = arith.addf %77, %88 : vector<4x4xf32>
    %90 = vector.extract_strided_slice %20 {offsets = [8, 8], sizes = [4, 4], strides = [1, 1]} : vector<24x24xf32> to vector<4x4xf32>
    %cst_22 = arith.constant dense<0xFF800000> : vector<4xf32>
    %91 = vector.multi_reduction <maximumf>, %90, %cst_22 [1] : vector<4x4xf32> to vector<4xf32>
    %92 = vector.shape_cast %91 : vector<4xf32> to vector<4x1xf32>
    %93 = vector.broadcast %92 : vector<4x1xf32> to vector<4x4xf32>
    %94 = arith.subf %90, %93 : vector<4x4xf32>
    %95 = math.exp %94 : vector<4x4xf32>
    %cst_23 = arith.constant dense<0.000000e+00> : vector<4xf32>
    %96 = vector.multi_reduction <add>, %95, %cst_23 [1] : vector<4x4xf32> to vector<4xf32>
    %97 = vector.shape_cast %96 : vector<4xf32> to vector<4x1xf32>
    %98 = tpu.reciprocal %97 : vector<4x1xf32> -> vector<4x1xf32>
    %99 = vector.broadcast %98 : vector<4x1xf32> to vector<4x4xf32>
    %100 = arith.mulf %95, %99 : vector<4x4xf32>
    %101 = arith.addf %89, %100 : vector<4x4xf32>
    %cst_24 = arith.constant 0.333333343 : f32
    %102 = vector.broadcast %cst_24 : f32 to vector<4x4xf32>
    %103 = arith.mulf %101, %102 : vector<4x4xf32>
    %104 = vector.extract_strided_slice %103 {offsets = [0, 0], sizes = [1, 4], strides = [1, 1]} : vector<4x4xf32> to vector<1x4xf32>
    %105 = vector.extract_strided_slice %103 {offsets = [1, 0], sizes = [1, 4], strides = [1, 1]} : vector<4x4xf32> to vector<1x4xf32>
    %106 = vector.extract_strided_slice %103 {offsets = [2, 0], sizes = [1, 4], strides = [1, 1]} : vector<4x4xf32> to vector<1x4xf32>
    %107 = vector.extract_strided_slice %103 {offsets = [3, 0], sizes = [1, 4], strides = [1, 1]} : vector<4x4xf32> to vector<1x4xf32>
    %108 = tpu.concatenate %104, %105, %106, %107 in 1 : vector<1x4xf32>, vector<1x4xf32>, vector<1x4xf32>, vector<1x4xf32> -> vector<1x16xf32>
    %109 = tpu.concatenate %64, %108 in 1 : vector<1x16xf32>, vector<1x16xf32> -> vector<1x32xf32>
    %cst_25 = arith.constant 0.000000e+00 : f32
    %110 = vector.broadcast %cst_25 : f32 to vector<4x4xf32>
    %111 = vector.extract_strided_slice %13 {offsets = [12, 12], sizes = [4, 4], strides = [1, 1]} : vector<24x24xf32> to vector<4x4xf32>
    %cst_26 = arith.constant dense<0xFF800000> : vector<4xf32>
    %112 = vector.multi_reduction <maximumf>, %111, %cst_26 [1] : vector<4x4xf32> to vector<4xf32>
    %113 = vector.shape_cast %112 : vector<4xf32> to vector<4x1xf32>
    %114 = vector.broadcast %113 : vector<4x1xf32> to vector<4x4xf32>
    %115 = arith.subf %111, %114 : vector<4x4xf32>
    %116 = math.exp %115 : vector<4x4xf32>
    %cst_27 = arith.constant dense<0.000000e+00> : vector<4xf32>
    %117 = vector.multi_reduction <add>, %116, %cst_27 [1] : vector<4x4xf32> to vector<4xf32>
    %118 = vector.shape_cast %117 : vector<4xf32> to vector<4x1xf32>
    %119 = tpu.reciprocal %118 : vector<4x1xf32> -> vector<4x1xf32>
    %120 = vector.broadcast %119 : vector<4x1xf32> to vector<4x4xf32>
    %121 = arith.mulf %116, %120 : vector<4x4xf32>
    %122 = arith.addf %110, %121 : vector<4x4xf32>
    %123 = vector.extract_strided_slice %13 {offsets = [16, 16], sizes = [4, 4], strides = [1, 1]} : vector<24x24xf32> to vector<4x4xf32>
    %cst_28 = arith.constant dense<0xFF800000> : vector<4xf32>
    %124 = vector.multi_reduction <maximumf>, %123, %cst_28 [1] : vector<4x4xf32> to vector<4xf32>
    %125 = vector.shape_cast %124 : vector<4xf32> to vector<4x1xf32>
    %126 = vector.broadcast %125 : vector<4x1xf32> to vector<4x4xf32>
    %127 = arith.subf %123, %126 : vector<4x4xf32>
    %128 = math.exp %127 : vector<4x4xf32>
    %cst_29 = arith.constant dense<0.000000e+00> : vector<4xf32>
    %129 = vector.multi_reduction <add>, %128, %cst_29 [1] : vector<4x4xf32> to vector<4xf32>
    %130 = vector.shape_cast %129 : vector<4xf32> to vector<4x1xf32>
    %131 = tpu.reciprocal %130 : vector<4x1xf32> -> vector<4x1xf32>
    %132 = vector.broadcast %131 : vector<4x1xf32> to vector<4x4xf32>
    %133 = arith.mulf %128, %132 : vector<4x4xf32>
    %134 = arith.addf %122, %133 : vector<4x4xf32>
    %135 = vector.extract_strided_slice %13 {offsets = [20, 20], sizes = [4, 4], strides = [1, 1]} : vector<24x24xf32> to vector<4x4xf32>
    %cst_30 = arith.constant dense<0xFF800000> : vector<4xf32>
    %136 = vector.multi_reduction <maximumf>, %135, %cst_30 [1] : vector<4x4xf32> to vector<4xf32>
    %137 = vector.shape_cast %136 : vector<4xf32> to vector<4x1xf32>
    %138 = vector.broadcast %137 : vector<4x1xf32> to vector<4x4xf32>
    %139 = arith.subf %135, %138 : vector<4x4xf32>
    %140 = math.exp %139 : vector<4x4xf32>
    %cst_31 = arith.constant dense<0.000000e+00> : vector<4xf32>
    %141 = vector.multi_reduction <add>, %140, %cst_31 [1] : vector<4x4xf32> to vector<4xf32>
    %142 = vector.shape_cast %141 : vector<4xf32> to vector<4x1xf32>
    %143 = tpu.reciprocal %142 : vector<4x1xf32> -> vector<4x1xf32>
    %144 = vector.broadcast %143 : vector<4x1xf32> to vector<4x4xf32>
    %145 = arith.mulf %140, %144 : vector<4x4xf32>
    %146 = arith.addf %134, %145 : vector<4x4xf32>
    %cst_32 = arith.constant 0.333333343 : f32
    %147 = vector.broadcast %cst_32 : f32 to vector<4x4xf32>
    %148 = arith.mulf %146, %147 : vector<4x4xf32>
    %149 = vector.extract_strided_slice %148 {offsets = [0, 0], sizes = [1, 4], strides = [1, 1]} : vector<4x4xf32> to vector<1x4xf32>
    %150 = vector.extract_strided_slice %148 {offsets = [1, 0], sizes = [1, 4], strides = [1, 1]} : vector<4x4xf32> to vector<1x4xf32>
    %151 = vector.extract_strided_slice %148 {offsets = [2, 0], sizes = [1, 4], strides = [1, 1]} : vector<4x4xf32> to vector<1x4xf32>
    %152 = vector.extract_strided_slice %148 {offsets = [3, 0], sizes = [1, 4], strides = [1, 1]} : vector<4x4xf32> to vector<1x4xf32>
    %153 = tpu.concatenate %149, %150, %151, %152 in 1 : vector<1x4xf32>, vector<1x4xf32>, vector<1x4xf32>, vector<1x4xf32> -> vector<1x16xf32>
    %cst_33 = arith.constant 0.000000e+00 : f32
    %154 = vector.broadcast %cst_33 : f32 to vector<4x4xf32>
    %155 = vector.extract_strided_slice %20 {offsets = [12, 12], sizes = [4, 4], strides = [1, 1]} : vector<24x24xf32> to vector<4x4xf32>
    %cst_34 = arith.constant dense<0xFF800000> : vector<4xf32>
    %156 = vector.multi_reduction <maximumf>, %155, %cst_34 [1] : vector<4x4xf32> to vector<4xf32>
    %157 = vector.shape_cast %156 : vector<4xf32> to vector<4x1xf32>
    %158 = vector.broadcast %157 : vector<4x1xf32> to vector<4x4xf32>
    %159 = arith.subf %155, %158 : vector<4x4xf32>
    %160 = math.exp %159 : vector<4x4xf32>
    %cst_35 = arith.constant dense<0.000000e+00> : vector<4xf32>
    %161 = vector.multi_reduction <add>, %160, %cst_35 [1] : vector<4x4xf32> to vector<4xf32>
    %162 = vector.shape_cast %161 : vector<4xf32> to vector<4x1xf32>
    %163 = tpu.reciprocal %162 : vector<4x1xf32> -> vector<4x1xf32>
    %164 = vector.broadcast %163 : vector<4x1xf32> to vector<4x4xf32>
    %165 = arith.mulf %160, %164 : vector<4x4xf32>
    %166 = arith.addf %154, %165 : vector<4x4xf32>
    %167 = vector.extract_strided_slice %20 {offsets = [16, 16], sizes = [4, 4], strides = [1, 1]} : vector<24x24xf32> to vector<4x4xf32>
    %cst_36 = arith.constant dense<0xFF800000> : vector<4xf32>
    %168 = vector.multi_reduction <maximumf>, %167, %cst_36 [1] : vector<4x4xf32> to vector<4xf32>
    %169 = vector.shape_cast %168 : vector<4xf32> to vector<4x1xf32>
    %170 = vector.broadcast %169 : vector<4x1xf32> to vector<4x4xf32>
    %171 = arith.subf %167, %170 : vector<4x4xf32>
    %172 = math.exp %171 : vector<4x4xf32>
    %cst_37 = arith.constant dense<0.000000e+00> : vector<4xf32>
    %173 = vector.multi_reduction <add>, %172, %cst_37 [1] : vector<4x4xf32> to vector<4xf32>
    %174 = vector.shape_cast %173 : vector<4xf32> to vector<4x1xf32>
    %175 = tpu.reciprocal %174 : vector<4x1xf32> -> vector<4x1xf32>
    %176 = vector.broadcast %175 : vector<4x1xf32> to vector<4x4xf32>
    %177 = arith.mulf %172, %176 : vector<4x4xf32>
    %178 = arith.addf %166, %177 : vector<4x4xf32>
    %179 = vector.extract_strided_slice %20 {offsets = [20, 20], sizes = [4, 4], strides = [1, 1]} : vector<24x24xf32> to vector<4x4xf32>
    %cst_38 = arith.constant dense<0xFF800000> : vector<4xf32>
    %180 = vector.multi_reduction <maximumf>, %179, %cst_38 [1] : vector<4x4xf32> to vector<4xf32>
    %181 = vector.shape_cast %180 : vector<4xf32> to vector<4x1xf32>
    %182 = vector.broadcast %181 : vector<4x1xf32> to vector<4x4xf32>
    %183 = arith.subf %179, %182 : vector<4x4xf32>
    %184 = math.exp %183 : vector<4x4xf32>
    %cst_39 = arith.constant dense<0.000000e+00> : vector<4xf32>
    %185 = vector.multi_reduction <add>, %184, %cst_39 [1] : vector<4x4xf32> to vector<4xf32>
    %186 = vector.shape_cast %185 : vector<4xf32> to vector<4x1xf32>
    %187 = tpu.reciprocal %186 : vector<4x1xf32> -> vector<4x1xf32>
    %188 = vector.broadcast %187 : vector<4x1xf32> to vector<4x4xf32>
    %189 = arith.mulf %184, %188 : vector<4x4xf32>
    %190 = arith.addf %178, %189 : vector<4x4xf32>
    %cst_40 = arith.constant 0.333333343 : f32
    %191 = vector.broadcast %cst_40 : f32 to vector<4x4xf32>
    %192 = arith.mulf %190, %191 : vector<4x4xf32>
    %193 = vector.extract_strided_slice %192 {offsets = [0, 0], sizes = [1, 4], strides = [1, 1]} : vector<4x4xf32> to vector<1x4xf32>
    %194 = vector.extract_strided_slice %192 {offsets = [1, 0], sizes = [1, 4], strides = [1, 1]} : vector<4x4xf32> to vector<1x4xf32>
    %195 = vector.extract_strided_slice %192 {offsets = [2, 0], sizes = [1, 4], strides = [1, 1]} : vector<4x4xf32> to vector<1x4xf32>
    %196 = vector.extract_strided_slice %192 {offsets = [3, 0], sizes = [1, 4], strides = [1, 1]} : vector<4x4xf32> to vector<1x4xf32>
    %197 = tpu.concatenate %193, %194, %195, %196 in 1 : vector<1x4xf32>, vector<1x4xf32>, vector<1x4xf32>, vector<1x4xf32> -> vector<1x16xf32>
    %198 = tpu.concatenate %153, %197 in 1 : vector<1x16xf32>, vector<1x16xf32> -> vector<1x32xf32>
    %199 = tpu.concatenate %109, %198 in 0 : vector<1x32xf32>, vector<1x32xf32> -> vector<2x32xf32>
    %c0_41 = arith.constant 0 : index
    %c0_42 = arith.constant 0 : index
    %200 = vector.load %arg4[%c0_41, %c0_42] : memref<2x32xf32, #tpu.memory_space<vmem>>, vector<2x32xf32>
    tpu.vector_store %arg4[%c0_41, %c0_42], %199 {strides = array<i32>} : memref<2x32xf32, #tpu.memory_space<vmem>>, vector<2x32xf32>,
    %201 = vector.extract_strided_slice %5 {offsets = [24, 0], sizes = [48, 512], strides = [1, 1]} : vector<72x512xf32> to vector<48x512xf32>
    %202 = vector.extract_strided_slice %201 {offsets = [0, 0], sizes = [48, 128], strides = [1, 1]} : vector<48x512xf32> to vector<48x128xf32>
    %203 = arith.truncf %202 : vector<48x128xf32> to vector<48x128xbf16>
    %204 = vector.extract_strided_slice %201 {offsets = [0, 256], sizes = [48, 128], strides = [1, 1]} : vector<48x512xf32> to vector<48x128xf32>
    %205 = arith.truncf %204 : vector<48x128xf32> to vector<48x128xbf16>
    "tpu.trace_start"() <{level = 10 : i32, message = "le,se->ls"}> : () -> ()
    %cst_43 = arith.constant dense<0.000000e+00> : vector<48x48xf32>
    %206 = tpu.matmul %203, %205, %cst_43 {dimension_numbers = #tpu.dot_dimension_numbers<[1], [1], [0], [0], [0, 0, 1, 0], [], []>} : vector<48x128xbf16>, vector<48x128xbf16>, vector<48x48xf32> -> vector<48x48xf32>
    "tpu.trace_stop"() : () -> ()
    %cst_44 = arith.constant 0.0883883461 : f32
    %207 = vector.broadcast %cst_44 : f32 to vector<48x48xf32>
    %208 = arith.mulf %206, %207 : vector<48x48xf32>
    %209 = vector.extract_strided_slice %201 {offsets = [0, 128], sizes = [48, 128], strides = [1, 1]} : vector<48x512xf32> to vector<48x128xf32>
    %210 = arith.truncf %209 : vector<48x128xf32> to vector<48x128xbf16>
    %211 = vector.extract_strided_slice %201 {offsets = [0, 384], sizes = [48, 128], strides = [1, 1]} : vector<48x512xf32> to vector<48x128xf32>
    %212 = arith.truncf %211 : vector<48x128xf32> to vector<48x128xbf16>
    "tpu.trace_start"() <{level = 10 : i32, message = "le,se->ls"}> : () -> ()
    %cst_45 = arith.constant dense<0.000000e+00> : vector<48x48xf32>
    %213 = tpu.matmul %210, %212, %cst_45 {dimension_numbers = #tpu.dot_dimension_numbers<[1], [1], [0], [0], [0, 0, 1, 0], [], []>} : vector<48x128xbf16>, vector<48x128xbf16>, vector<48x48xf32> -> vector<48x48xf32>
    "tpu.trace_stop"() : () -> ()
    %cst_46 = arith.constant 0.0883883461 : f32
    %214 = vector.broadcast %cst_46 : f32 to vector<48x48xf32>
    %215 = arith.mulf %213, %214 : vector<48x48xf32>
    %cst_47 = arith.constant 0.000000e+00 : f32
    %216 = vector.broadcast %cst_47 : f32 to vector<8x8xf32>
    %217 = vector.extract_strided_slice %208 {offsets = [0, 0], sizes = [8, 8], strides = [1, 1]} : vector<48x48xf32> to vector<8x8xf32>
    %cst_48 = arith.constant dense<0xFF800000> : vector<8xf32>
    %218 = vector.multi_reduction <maximumf>, %217, %cst_48 [1] : vector<8x8xf32> to vector<8xf32>
    %219 = vector.shape_cast %218 : vector<8xf32> to vector<8x1xf32>
    %220 = vector.broadcast %219 : vector<8x1xf32> to vector<8x8xf32>
    %221 = arith.subf %217, %220 : vector<8x8xf32>
    %222 = math.exp %221 : vector<8x8xf32>
    %cst_49 = arith.constant dense<0.000000e+00> : vector<8xf32>
    %223 = vector.multi_reduction <add>, %222, %cst_49 [1] : vector<8x8xf32> to vector<8xf32>
    %224 = vector.shape_cast %223 : vector<8xf32> to vector<8x1xf32>
    %225 = tpu.reciprocal %224 : vector<8x1xf32> -> vector<8x1xf32>
    %226 = vector.broadcast %225 : vector<8x1xf32> to vector<8x8xf32>
    %227 = arith.mulf %222, %226 : vector<8x8xf32>
    %228 = arith.addf %216, %227 : vector<8x8xf32>
    %229 = vector.extract_strided_slice %208 {offsets = [8, 8], sizes = [8, 8], strides = [1, 1]} : vector<48x48xf32> to vector<8x8xf32>
    %cst_50 = arith.constant dense<0xFF800000> : vector<8xf32>
    %230 = vector.multi_reduction <maximumf>, %229, %cst_50 [1] : vector<8x8xf32> to vector<8xf32>
    %231 = vector.shape_cast %230 : vector<8xf32> to vector<8x1xf32>
    %232 = vector.broadcast %231 : vector<8x1xf32> to vector<8x8xf32>
    %233 = arith.subf %229, %232 : vector<8x8xf32>
    %234 = math.exp %233 : vector<8x8xf32>
    %cst_51 = arith.constant dense<0.000000e+00> : vector<8xf32>
    %235 = vector.multi_reduction <add>, %234, %cst_51 [1] : vector<8x8xf32> to vector<8xf32>
    %236 = vector.shape_cast %235 : vector<8xf32> to vector<8x1xf32>
    %237 = tpu.reciprocal %236 : vector<8x1xf32> -> vector<8x1xf32>
    %238 = vector.broadcast %237 : vector<8x1xf32> to vector<8x8xf32>
    %239 = arith.mulf %234, %238 : vector<8x8xf32>
    %240 = arith.addf %228, %239 : vector<8x8xf32>
    %241 = vector.extract_strided_slice %208 {offsets = [16, 16], sizes = [8, 8], strides = [1, 1]} : vector<48x48xf32> to vector<8x8xf32>
    %cst_52 = arith.constant dense<0xFF800000> : vector<8xf32>
    %242 = vector.multi_reduction <maximumf>, %241, %cst_52 [1] : vector<8x8xf32> to vector<8xf32>
    %243 = vector.shape_cast %242 : vector<8xf32> to vector<8x1xf32>
    %244 = vector.broadcast %243 : vector<8x1xf32> to vector<8x8xf32>
    %245 = arith.subf %241, %244 : vector<8x8xf32>
    %246 = math.exp %245 : vector<8x8xf32>
    %cst_53 = arith.constant dense<0.000000e+00> : vector<8xf32>
    %247 = vector.multi_reduction <add>, %246, %cst_53 [1] : vector<8x8xf32> to vector<8xf32>
    %248 = vector.shape_cast %247 : vector<8xf32> to vector<8x1xf32>
    %249 = tpu.reciprocal %248 : vector<8x1xf32> -> vector<8x1xf32>
    %250 = vector.broadcast %249 : vector<8x1xf32> to vector<8x8xf32>
    %251 = arith.mulf %246, %250 : vector<8x8xf32>
    %252 = arith.addf %240, %251 : vector<8x8xf32>
    %cst_54 = arith.constant 0.333333343 : f32
    %253 = vector.broadcast %cst_54 : f32 to vector<8x8xf32>
    %254 = arith.mulf %252, %253 : vector<8x8xf32>
    %255 = vector.extract_strided_slice %254 {offsets = [0, 0], sizes = [1, 8], strides = [1, 1]} : vector<8x8xf32> to vector<1x8xf32>
    %256 = vector.extract_strided_slice %254 {offsets = [1, 0], sizes = [1, 8], strides = [1, 1]} : vector<8x8xf32> to vector<1x8xf32>
    %257 = vector.extract_strided_slice %254 {offsets = [2, 0], sizes = [1, 8], strides = [1, 1]} : vector<8x8xf32> to vector<1x8xf32>
    %258 = vector.extract_strided_slice %254 {offsets = [3, 0], sizes = [1, 8], strides = [1, 1]} : vector<8x8xf32> to vector<1x8xf32>
    %259 = vector.extract_strided_slice %254 {offsets = [4, 0], sizes = [1, 8], strides = [1, 1]} : vector<8x8xf32> to vector<1x8xf32>
    %260 = vector.extract_strided_slice %254 {offsets = [5, 0], sizes = [1, 8], strides = [1, 1]} : vector<8x8xf32> to vector<1x8xf32>
    %261 = vector.extract_strided_slice %254 {offsets = [6, 0], sizes = [1, 8], strides = [1, 1]} : vector<8x8xf32> to vector<1x8xf32>
    %262 = vector.extract_strided_slice %254 {offsets = [7, 0], sizes = [1, 8], strides = [1, 1]} : vector<8x8xf32> to vector<1x8xf32>
    %263 = tpu.concatenate %255, %256, %257, %258, %259, %260, %261, %262 in 1 : vector<1x8xf32>, vector<1x8xf32>, vector<1x8xf32>, vector<1x8xf32>, vector<1x8xf32>, vector<1x8xf32>, vector<1x8xf32>, vector<1x8xf32> -> vector<1x64xf32>
    %cst_55 = arith.constant 0.000000e+00 : f32
    %264 = vector.broadcast %cst_55 : f32 to vector<8x8xf32>
    %265 = vector.extract_strided_slice %215 {offsets = [0, 0], sizes = [8, 8], strides = [1, 1]} : vector<48x48xf32> to vector<8x8xf32>
    %cst_56 = arith.constant dense<0xFF800000> : vector<8xf32>
    %266 = vector.multi_reduction <maximumf>, %265, %cst_56 [1] : vector<8x8xf32> to vector<8xf32>
    %267 = vector.shape_cast %266 : vector<8xf32> to vector<8x1xf32>
    %268 = vector.broadcast %267 : vector<8x1xf32> to vector<8x8xf32>
    %269 = arith.subf %265, %268 : vector<8x8xf32>
    %270 = math.exp %269 : vector<8x8xf32>
    %cst_57 = arith.constant dense<0.000000e+00> : vector<8xf32>
    %271 = vector.multi_reduction <add>, %270, %cst_57 [1] : vector<8x8xf32> to vector<8xf32>
    %272 = vector.shape_cast %271 : vector<8xf32> to vector<8x1xf32>
    %273 = tpu.reciprocal %272 : vector<8x1xf32> -> vector<8x1xf32>
    %274 = vector.broadcast %273 : vector<8x1xf32> to vector<8x8xf32>
    %275 = arith.mulf %270, %274 : vector<8x8xf32>
    %276 = arith.addf %264, %275 : vector<8x8xf32>
    %277 = vector.extract_strided_slice %215 {offsets = [8, 8], sizes = [8, 8], strides = [1, 1]} : vector<48x48xf32> to vector<8x8xf32>
    %cst_58 = arith.constant dense<0xFF800000> : vector<8xf32>
    %278 = vector.multi_reduction <maximumf>, %277, %cst_58 [1] : vector<8x8xf32> to vector<8xf32>
    %279 = vector.shape_cast %278 : vector<8xf32> to vector<8x1xf32>
    %280 = vector.broadcast %279 : vector<8x1xf32> to vector<8x8xf32>
    %281 = arith.subf %277, %280 : vector<8x8xf32>
    %282 = math.exp %281 : vector<8x8xf32>
    %cst_59 = arith.constant dense<0.000000e+00> : vector<8xf32>
    %283 = vector.multi_reduction <add>, %282, %cst_59 [1] : vector<8x8xf32> to vector<8xf32>
    %284 = vector.shape_cast %283 : vector<8xf32> to vector<8x1xf32>
    %285 = tpu.reciprocal %284 : vector<8x1xf32> -> vector<8x1xf32>
    %286 = vector.broadcast %285 : vector<8x1xf32> to vector<8x8xf32>
    %287 = arith.mulf %282, %286 : vector<8x8xf32>
    %288 = arith.addf %276, %287 : vector<8x8xf32>
    %289 = vector.extract_strided_slice %215 {offsets = [16, 16], sizes = [8, 8], strides = [1, 1]} : vector<48x48xf32> to vector<8x8xf32>
    %cst_60 = arith.constant dense<0xFF800000> : vector<8xf32>
    %290 = vector.multi_reduction <maximumf>, %289, %cst_60 [1] : vector<8x8xf32> to vector<8xf32>
    %291 = vector.shape_cast %290 : vector<8xf32> to vector<8x1xf32>
    %292 = vector.broadcast %291 : vector<8x1xf32> to vector<8x8xf32>
    %293 = arith.subf %289, %292 : vector<8x8xf32>
    %294 = math.exp %293 : vector<8x8xf32>
    %cst_61 = arith.constant dense<0.000000e+00> : vector<8xf32>
    %295 = vector.multi_reduction <add>, %294, %cst_61 [1] : vector<8x8xf32> to vector<8xf32>
    %296 = vector.shape_cast %295 : vector<8xf32> to vector<8x1xf32>
    %297 = tpu.reciprocal %296 : vector<8x1xf32> -> vector<8x1xf32>
    %298 = vector.broadcast %297 : vector<8x1xf32> to vector<8x8xf32>
    %299 = arith.mulf %294, %298 : vector<8x8xf32>
    %300 = arith.addf %288, %299 : vector<8x8xf32>
    %cst_62 = arith.constant 0.333333343 : f32
    %301 = vector.broadcast %cst_62 : f32 to vector<8x8xf32>
    %302 = arith.mulf %300, %301 : vector<8x8xf32>
    %303 = vector.extract_strided_slice %302 {offsets = [0, 0], sizes = [1, 8], strides = [1, 1]} : vector<8x8xf32> to vector<1x8xf32>
    %304 = vector.extract_strided_slice %302 {offsets = [1, 0], sizes = [1, 8], strides = [1, 1]} : vector<8x8xf32> to vector<1x8xf32>
    %305 = vector.extract_strided_slice %302 {offsets = [2, 0], sizes = [1, 8], strides = [1, 1]} : vector<8x8xf32> to vector<1x8xf32>
    %306 = vector.extract_strided_slice %302 {offsets = [3, 0], sizes = [1, 8], strides = [1, 1]} : vector<8x8xf32> to vector<1x8xf32>
    %307 = vector.extract_strided_slice %302 {offsets = [4, 0], sizes = [1, 8], strides = [1, 1]} : vector<8x8xf32> to vector<1x8xf32>
    %308 = vector.extract_strided_slice %302 {offsets = [5, 0], sizes = [1, 8], strides = [1, 1]} : vector<8x8xf32> to vector<1x8xf32>
    %309 = vector.extract_strided_slice %302 {offsets = [6, 0], sizes = [1, 8], strides = [1, 1]} : vector<8x8xf32> to vector<1x8xf32>
    %310 = vector.extract_strided_slice %302 {offsets = [7, 0], sizes = [1, 8], strides = [1, 1]} : vector<8x8xf32> to vector<1x8xf32>
    %311 = tpu.concatenate %303, %304, %305, %306, %307, %308, %309, %310 in 1 : vector<1x8xf32>, vector<1x8xf32>, vector<1x8xf32>, vector<1x8xf32>, vector<1x8xf32>, vector<1x8xf32>, vector<1x8xf32>, vector<1x8xf32> -> vector<1x64xf32>
    %312 = tpu.concatenate %263, %311 in 1 : vector<1x64xf32>, vector<1x64xf32> -> vector<1x128xf32>
    %cst_63 = arith.constant 0.000000e+00 : f32
    %313 = vector.broadcast %cst_63 : f32 to vector<8x8xf32>
    %314 = vector.extract_strided_slice %208 {offsets = [24, 24], sizes = [8, 8], strides = [1, 1]} : vector<48x48xf32> to vector<8x8xf32>
    %cst_64 = arith.constant dense<0xFF800000> : vector<8xf32>
    %315 = vector.multi_reduction <maximumf>, %314, %cst_64 [1] : vector<8x8xf32> to vector<8xf32>
    %316 = vector.shape_cast %315 : vector<8xf32> to vector<8x1xf32>
    %317 = vector.broadcast %316 : vector<8x1xf32> to vector<8x8xf32>
    %318 = arith.subf %314, %317 : vector<8x8xf32>
    %319 = math.exp %318 : vector<8x8xf32>
    %cst_65 = arith.constant dense<0.000000e+00> : vector<8xf32>
    %320 = vector.multi_reduction <add>, %319, %cst_65 [1] : vector<8x8xf32> to vector<8xf32>
    %321 = vector.shape_cast %320 : vector<8xf32> to vector<8x1xf32>
    %322 = tpu.reciprocal %321 : vector<8x1xf32> -> vector<8x1xf32>
    %323 = vector.broadcast %322 : vector<8x1xf32> to vector<8x8xf32>
    %324 = arith.mulf %319, %323 : vector<8x8xf32>
    %325 = arith.addf %313, %324 : vector<8x8xf32>
    %326 = vector.extract_strided_slice %208 {offsets = [32, 32], sizes = [8, 8], strides = [1, 1]} : vector<48x48xf32> to vector<8x8xf32>
    %cst_66 = arith.constant dense<0xFF800000> : vector<8xf32>
    %327 = vector.multi_reduction <maximumf>, %326, %cst_66 [1] : vector<8x8xf32> to vector<8xf32>
    %328 = vector.shape_cast %327 : vector<8xf32> to vector<8x1xf32>
    %329 = vector.broadcast %328 : vector<8x1xf32> to vector<8x8xf32>
    %330 = arith.subf %326, %329 : vector<8x8xf32>
    %331 = math.exp %330 : vector<8x8xf32>
    %cst_67 = arith.constant dense<0.000000e+00> : vector<8xf32>
    %332 = vector.multi_reduction <add>, %331, %cst_67 [1] : vector<8x8xf32> to vector<8xf32>
    %333 = vector.shape_cast %332 : vector<8xf32> to vector<8x1xf32>
    %334 = tpu.reciprocal %333 : vector<8x1xf32> -> vector<8x1xf32>
    %335 = vector.broadcast %334 : vector<8x1xf32> to vector<8x8xf32>
    %336 = arith.mulf %331, %335 : vector<8x8xf32>
    %337 = arith.addf %325, %336 : vector<8x8xf32>
    %338 = vector.extract_strided_slice %208 {offsets = [40, 40], sizes = [8, 8], strides = [1, 1]} : vector<48x48xf32> to vector<8x8xf32>
    %cst_68 = arith.constant dense<0xFF800000> : vector<8xf32>
    %339 = vector.multi_reduction <maximumf>, %338, %cst_68 [1] : vector<8x8xf32> to vector<8xf32>
    %340 = vector.shape_cast %339 : vector<8xf32> to vector<8x1xf32>
    %341 = vector.broadcast %340 : vector<8x1xf32> to vector<8x8xf32>
    %342 = arith.subf %338, %341 : vector<8x8xf32>
    %343 = math.exp %342 : vector<8x8xf32>
    %cst_69 = arith.constant dense<0.000000e+00> : vector<8xf32>
    %344 = vector.multi_reduction <add>, %343, %cst_69 [1] : vector<8x8xf32> to vector<8xf32>
    %345 = vector.shape_cast %344 : vector<8xf32> to vector<8x1xf32>
    %346 = tpu.reciprocal %345 : vector<8x1xf32> -> vector<8x1xf32>
    %347 = vector.broadcast %346 : vector<8x1xf32> to vector<8x8xf32>
    %348 = arith.mulf %343, %347 : vector<8x8xf32>
    %349 = arith.addf %337, %348 : vector<8x8xf32>
    %cst_70 = arith.constant 0.333333343 : f32
    %350 = vector.broadcast %cst_70 : f32 to vector<8x8xf32>
    %351 = arith.mulf %349, %350 : vector<8x8xf32>
    %352 = vector.extract_strided_slice %351 {offsets = [0, 0], sizes = [1, 8], strides = [1, 1]} : vector<8x8xf32> to vector<1x8xf32>
    %353 = vector.extract_strided_slice %351 {offsets = [1, 0], sizes = [1, 8], strides = [1, 1]} : vector<8x8xf32> to vector<1x8xf32>
    %354 = vector.extract_strided_slice %351 {offsets = [2, 0], sizes = [1, 8], strides = [1, 1]} : vector<8x8xf32> to vector<1x8xf32>
    %355 = vector.extract_strided_slice %351 {offsets = [3, 0], sizes = [1, 8], strides = [1, 1]} : vector<8x8xf32> to vector<1x8xf32>
    %356 = vector.extract_strided_slice %351 {offsets = [4, 0], sizes = [1, 8], strides = [1, 1]} : vector<8x8xf32> to vector<1x8xf32>
    %357 = vector.extract_strided_slice %351 {offsets = [5, 0], sizes = [1, 8], strides = [1, 1]} : vector<8x8xf32> to vector<1x8xf32>
    %358 = vector.extract_strided_slice %351 {offsets = [6, 0], sizes = [1, 8], strides = [1, 1]} : vector<8x8xf32> to vector<1x8xf32>
    %359 = vector.extract_strided_slice %351 {offsets = [7, 0], sizes = [1, 8], strides = [1, 1]} : vector<8x8xf32> to vector<1x8xf32>
    %360 = tpu.concatenate %352, %353, %354, %355, %356, %357, %358, %359 in 1 : vector<1x8xf32>, vector<1x8xf32>, vector<1x8xf32>, vector<1x8xf32>, vector<1x8xf32>, vector<1x8xf32>, vector<1x8xf32>, vector<1x8xf32> -> vector<1x64xf32>
    %cst_71 = arith.constant 0.000000e+00 : f32
    %361 = vector.broadcast %cst_71 : f32 to vector<8x8xf32>
    %362 = vector.extract_strided_slice %215 {offsets = [24, 24], sizes = [8, 8], strides = [1, 1]} : vector<48x48xf32> to vector<8x8xf32>
    %cst_72 = arith.constant dense<0xFF800000> : vector<8xf32>
    %363 = vector.multi_reduction <maximumf>, %362, %cst_72 [1] : vector<8x8xf32> to vector<8xf32>
    %364 = vector.shape_cast %363 : vector<8xf32> to vector<8x1xf32>
    %365 = vector.broadcast %364 : vector<8x1xf32> to vector<8x8xf32>
    %366 = arith.subf %362, %365 : vector<8x8xf32>
    %367 = math.exp %366 : vector<8x8xf32>
    %cst_73 = arith.constant dense<0.000000e+00> : vector<8xf32>
    %368 = vector.multi_reduction <add>, %367, %cst_73 [1] : vector<8x8xf32> to vector<8xf32>
    %369 = vector.shape_cast %368 : vector<8xf32> to vector<8x1xf32>
    %370 = tpu.reciprocal %369 : vector<8x1xf32> -> vector<8x1xf32>
    %371 = vector.broadcast %370 : vector<8x1xf32> to vector<8x8xf32>
    %372 = arith.mulf %367, %371 : vector<8x8xf32>
    %373 = arith.addf %361, %372 : vector<8x8xf32>
    %374 = vector.extract_strided_slice %215 {offsets = [32, 32], sizes = [8, 8], strides = [1, 1]} : vector<48x48xf32> to vector<8x8xf32>
    %cst_74 = arith.constant dense<0xFF800000> : vector<8xf32>
    %375 = vector.multi_reduction <maximumf>, %374, %cst_74 [1] : vector<8x8xf32> to vector<8xf32>
    %376 = vector.shape_cast %375 : vector<8xf32> to vector<8x1xf32>
    %377 = vector.broadcast %376 : vector<8x1xf32> to vector<8x8xf32>
    %378 = arith.subf %374, %377 : vector<8x8xf32>
    %379 = math.exp %378 : vector<8x8xf32>
    %cst_75 = arith.constant dense<0.000000e+00> : vector<8xf32>
    %380 = vector.multi_reduction <add>, %379, %cst_75 [1] : vector<8x8xf32> to vector<8xf32>
    %381 = vector.shape_cast %380 : vector<8xf32> to vector<8x1xf32>
    %382 = tpu.reciprocal %381 : vector<8x1xf32> -> vector<8x1xf32>
    %383 = vector.broadcast %382 : vector<8x1xf32> to vector<8x8xf32>
    %384 = arith.mulf %379, %383 : vector<8x8xf32>
    %385 = arith.addf %373, %384 : vector<8x8xf32>
    %386 = vector.extract_strided_slice %215 {offsets = [40, 40], sizes = [8, 8], strides = [1, 1]} : vector<48x48xf32> to vector<8x8xf32>
    %cst_76 = arith.constant dense<0xFF800000> : vector<8xf32>
    %387 = vector.multi_reduction <maximumf>, %386, %cst_76 [1] : vector<8x8xf32> to vector<8xf32>
    %388 = vector.shape_cast %387 : vector<8xf32> to vector<8x1xf32>
    %389 = vector.broadcast %388 : vector<8x1xf32> to vector<8x8xf32>
    %390 = arith.subf %386, %389 : vector<8x8xf32>
    %391 = math.exp %390 : vector<8x8xf32>
    %cst_77 = arith.constant dense<0.000000e+00> : vector<8xf32>
    %392 = vector.multi_reduction <add>, %391, %cst_77 [1] : vector<8x8xf32> to vector<8xf32>
    %393 = vector.shape_cast %392 : vector<8xf32> to vector<8x1xf32>
    %394 = tpu.reciprocal %393 : vector<8x1xf32> -> vector<8x1xf32>
    %395 = vector.broadcast %394 : vector<8x1xf32> to vector<8x8xf32>
    %396 = arith.mulf %391, %395 : vector<8x8xf32>
    %397 = arith.addf %385, %396 : vector<8x8xf32>
    %cst_78 = arith.constant 0.333333343 : f32
    %398 = vector.broadcast %cst_78 : f32 to vector<8x8xf32>
    %399 = arith.mulf %397, %398 : vector<8x8xf32>
    %400 = vector.extract_strided_slice %399 {offsets = [0, 0], sizes = [1, 8], strides = [1, 1]} : vector<8x8xf32> to vector<1x8xf32>
    %401 = vector.extract_strided_slice %399 {offsets = [1, 0], sizes = [1, 8], strides = [1, 1]} : vector<8x8xf32> to vector<1x8xf32>
    %402 = vector.extract_strided_slice %399 {offsets = [2, 0], sizes = [1, 8], strides = [1, 1]} : vector<8x8xf32> to vector<1x8xf32>
    %403 = vector.extract_strided_slice %399 {offsets = [3, 0], sizes = [1, 8], strides = [1, 1]} : vector<8x8xf32> to vector<1x8xf32>
    %404 = vector.extract_strided_slice %399 {offsets = [4, 0], sizes = [1, 8], strides = [1, 1]} : vector<8x8xf32> to vector<1x8xf32>
    %405 = vector.extract_strided_slice %399 {offsets = [5, 0], sizes = [1, 8], strides = [1, 1]} : vector<8x8xf32> to vector<1x8xf32>
    %406 = vector.extract_strided_slice %399 {offsets = [6, 0], sizes = [1, 8], strides = [1, 1]} : vector<8x8xf32> to vector<1x8xf32>
    %407 = vector.extract_strided_slice %399 {offsets = [7, 0], sizes = [1, 8], strides = [1, 1]} : vector<8x8xf32> to vector<1x8xf32>
    %408 = tpu.concatenate %400, %401, %402, %403, %404, %405, %406, %407 in 1 : vector<1x8xf32>, vector<1x8xf32>, vector<1x8xf32>, vector<1x8xf32>, vector<1x8xf32>, vector<1x8xf32>, vector<1x8xf32>, vector<1x8xf32> -> vector<1x64xf32>
    %409 = tpu.concatenate %360, %408 in 1 : vector<1x64xf32>, vector<1x64xf32> -> vector<1x128xf32>
    %410 = tpu.concatenate %312, %409 in 0 : vector<1x128xf32>, vector<1x128xf32> -> vector<2x128xf32>
    %c0_79 = arith.constant 0 : index
    %c0_80 = arith.constant 0 : index
    %411 = vector.load %arg5[%c0_79, %c0_80] : memref<2x128xf32, #tpu.memory_space<vmem>>, vector<2x128xf32>
    tpu.vector_store %arg5[%c0_79, %c0_80], %410 {strides = array<i32>} : memref<2x128xf32, #tpu.memory_space<vmem>>, vector<2x128xf32>,
    return
  }
  func.func @transform_0(%arg0: i32) -> (i32, i32) {
    %c0_i32 = arith.constant 0 : i32
    %c0_i32_0 = arith.constant 0 : i32
    %c0_i32_1 = arith.constant 0 : i32
    return %c0_i32, %c0_i32_0 : i32, i32
  }
  func.func @transform_1(%arg0: i32) -> (i32, i32) {
    %c0_i32 = arith.constant 0 : i32
    %c0_i32_0 = arith.constant 0 : i32
    %c0_i32_1 = arith.constant 0 : i32
    return %c0_i32, %c0_i32_0 : i32, i32
  }
  func.func @transform_2(%arg0: i32) -> (i32, i32) {
    %c0_i32 = arith.constant 0 : i32
    %c0_i32_0 = arith.constant 0 : i32
    %c0_i32_1 = arith.constant 0 : i32
    return %c0_i32, %c0_i32_0 : i32, i32
  }
  func.func @transform_3(%arg0: i32) -> (i32, i32) {
    %c0_i32 = arith.constant 0 : i32
    %c0_i32_0 = arith.constant 0 : i32
    %c0_i32_1 = arith.constant 0 : i32
    return %c0_i32, %c0_i32_0 : i32, i32
  }
  func.func @transform_4(%arg0: i32) -> (i32, i32) {
    %c0_i32 = arith.constant 0 : i32
    %c0_i32_0 = arith.constant 0 : i32
    %c0_i32_1 = arith.constant 0 : i32
    return %c0_i32, %c0_i32_0 : i32, i32
  }
}

</mosaic_0001>

<bundles_post_ra>
// kernel: tpu_custom_call.1
= control target key start
LH: loop header
LB: loop body
LE: loop exit
PB: predicated region body
PF: predicated region fallthrough
CT: control target
= control target key end

     0   :  { %10 = vsyncpa [#allocation3], 0  ;;  %s2754_s0 = inlined_call_operand.hbm [shape: bf16[72,256], index: 0, kind: input, shape index: {}]   ;;  %s2755_s1 = inlined_call_operand.hbm [shape: bf16[256,512], index: 1, kind: input, shape index: {}]   ;;  %s2756_s2 = inlined_call_operand.vmem [shape: f32[1,512], index: 2, kind: input, shape index: {}]   ;;  %s2757_s3 = inlined_call_operand.hbm [shape: f32[2,32], index: 3, kind: output, shape index: {0}]   ;;  %s2758_s4 = inlined_call_operand.hbm [shape: f32[2,128], index: 4, kind: output, shape index: {1}]  }
   0x1   :  { %11 = vsyncpa [#allocation6], 0 }
   0x2   :  { %12 = vsyncpa [#allocation4], 0 }
   0x3   :  { %13 = vsyncpa [#allocation9], 0  ;;  %s2133_s15 = smov [#allocation2]   ;;  %s2037_s19 = scalar_lea.hbm %s2754_s0, 1152 }
   0x4   :  { %s19_s16 = sshll.u32 %s2133_s15, 4  ;;  %p2038_p0 = scmp.ne.s32.totalorder %s2754_s0, %s2037_s19  ;;  %s20_s16 = int_to_ptr.vmem [resolvable:$true] %s19_s16 }
   0x5   :  { %p2041_p1 = scmp.lt.u32.totalorder %s2037_s19, %s2754_s0 }
   0x7   :  { %p2043_p2 = pnand %p2041_p1, %p2038_p0 }
   0x9   :  { %2046 = shalt.err (!%p2043_p2)
}
   0xa   :  { %s2047_s24 = scalar_lea.vmem %s20_s16, 1152  ;;  %p2052_p4 = scmp.lt.s32.totalorder %s20_s16, %s20_s16 }
   0xb   :  { %p2048_p3 = scmp.ne.s32.totalorder %s20_s16, %s2047_s24  ;;  %p2053_p5 = scmp.lt.s32.totalorder %s2047_s24, %s2047_s24 }
   0xd   :  { %p2054_p6 = por %p2053_p5, %p2052_p4 }
   0xf   :  { %p2055_p7 = pnand %p2054_p6, %p2048_p3 }
  0x11   :  { %2058 = shalt.err (!%p2055_p7)
}
  0x12   :  { %s2134_s25 = smov 128   ;;  %s2135_s26 = smov 8  }
  0x13   :  { %25 = dma.hbm_to_vmem [thread:$0]  %s2754_s0, 1152, %s20_s16, [#allocation3], %s2134_s25, %s2134_s25, %s2135_s26  }
  0x14   :  { %s2136_s29 = smov [#allocation5]   ;;  %s2059_s7 = scalar_lea.hbm %s2755_s1, 8192 }
  0x15   :  { %s31_s30 = sshll.u32 %s2136_s29, 4  ;;  %p2060_p8 = scmp.ne.s32.totalorder %s2755_s1, %s2059_s7  ;;  %s32_s30 = int_to_ptr.vmem [resolvable:$true] %s31_s30 }
  0x16   :  { %p2063_p9 = scmp.lt.u32.totalorder %s2059_s7, %s2755_s1 }
  0x18   :  { %p2065_p10 = pnand %p2063_p9, %p2060_p8 }
  0x1a   :  { %2068 = shalt.err (!%p2065_p10)
}
  0x1b   :  { %s2069_s12 = scalar_lea.vmem %s32_s30, 8192  ;;  %p2074_p12 = scmp.lt.s32.totalorder %s32_s30, %s32_s30 }
  0x1c   :  { %p2070_p11 = scmp.ne.s32.totalorder %s32_s30, %s2069_s12  ;;  %p2075_p13 = scmp.lt.s32.totalorder %s2069_s12, %s2069_s12 }
  0x1e   :  { %p2076_p0 = por %p2075_p13, %p2074_p12 }
  0x20   :  { %p2077_p1 = pnand %p2076_p0, %p2070_p11 }
  0x22   :  { %2080 = shalt.err (!%p2077_p1)
}
  0x23   :  { %s2137_s0 = smov 256   ;;  %s2138_s13 = smov 16  }
  0x24   :  { %37 = dma.hbm_to_vmem [thread:$0]  %s2755_s1, 8192, %s32_s30, [#allocation6], %s2137_s0, %s2137_s0, %s2138_s13  }
  0x25   :  { %2125 = dma.done.wait [#allocation3], 1152  }
  0x26   :  { %2126 = vsyncadd [#allocation3], 4294966144 }
  0x27   :  { %2127 = dma.done.wait [#allocation6], 8192  }
  0x28   :  { %2128 = vsyncadd [#allocation6], 4294959104  ;;  %v1831_v0 = vld [vmem:[#allocation5 + $0xc] ss:$16 sps:$4 sm:$0xff]   ;;  %v1833_v1 = vld [vmem:[#allocation5 + $0x8] ss:$16 sps:$4 sm:$0xff]  }
  0x29   :  { %590 = vmatprep.subr.bf16.mxu1 %v1831_v0  ;;  %v1834_v2 = vld [vmem:[#allocation5 + $0x2c] ss:$16 sps:$4 sm:$0xff]   ;;  %v1836_v3 = vld [vmem:[#allocation5 + $0x28] ss:$16 sps:$4 sm:$0xff]   ;;  %v1840_v5 = vld [vmem:[#allocation5 + $0x4] ss:$16 sps:$4 sm:$0xff]  }
  0x2a   :  { %591 = vmatpush1.bf16.msra.mxu1 %v1833_v1  ;;  %v1837_v4 = vld [vmem:[#allocation5 + $0x4c] ss:$16 sps:$4 sm:$0xff]   ;;  %v1842_v6 = vld [vmem:[#allocation5] ss:$16 sps:$4 sm:$0xff]   ;;  %v1839_v7 = vld [vmem:[#allocation5 + $0x48] ss:$16 sps:$4 sm:$0xff]   ;;  %509 = vmatprep.subr.bf16.mxu0 %v1840_v5 }
  0x2b   :  { %592 = vmatprep.subr.bf16.mxu1 %v1834_v2  ;;  %510 = vmatpush1.bf16.msra.mxu0 %v1842_v6  ;;  %v1846_v8 = vld [vmem:[#allocation5 + $0x24] ss:$16 sps:$4 sm:$0xff]   ;;  %v1848_v9 = vld [vmem:[#allocation5 + $0x20] ss:$16 sps:$4 sm:$0xff]   ;;  %v1843_v10 = vld [vmem:[#allocation5 + $0x6c] ss:$16 sps:$4 sm:$0xff]  }
  0x2c   :  { %511 = vmatprep.subr.bf16.mxu0 %v1846_v8  ;;  %v1845_v11 = vld [vmem:[#allocation5 + $0x68] ss:$16 sps:$4 sm:$0xff]   ;;  %v1852_v12 = vld [vmem:[#allocation5 + $0x44] ss:$16 sps:$4 sm:$0xff]   ;;  %v1849_v13 = vld [vmem:[#allocation5 + $0x8c] ss:$16 sps:$4 sm:$0xff]  }
  0x2d   :  { %v1854_v14 = vld [vmem:[#allocation5 + $0x40] ss:$16 sps:$4 sm:$0xff]   ;;  %v1858_v15 = vld [vmem:[#allocation5 + $0x64] ss:$16 sps:$4 sm:$0xff]   ;;  %v1851_v16 = vld [vmem:[#allocation5 + $0x88] ss:$16 sps:$4 sm:$0xff]  }
  0x2e   :  { %593 = vmatpush1.bf16.msra.mxu1 %v1836_v3  ;;  %v1855_v17 = vld [vmem:[#allocation5 + $0xac] ss:$16 sps:$4 sm:$0xff]   ;;  %v1860_v18 = vld [vmem:[#allocation5 + $0x60] ss:$16 sps:$4 sm:$0xff]   ;;  %v1864_v19 = vld [vmem:[#allocation5 + $0x84] ss:$16 sps:$4 sm:$0xff]  }
  0x2f   :  { %594 = vmatprep.subr.bf16.mxu1 %v1837_v4  ;;  %512 = vmatpush1.bf16.msra.mxu0 %v1848_v9  ;;  %v1857_v20 = vld [vmem:[#allocation5 + $0xa8] ss:$16 sps:$4 sm:$0xff]   ;;  %v1861_v21 = vld [vmem:[#allocation5 + $0xcc] ss:$16 sps:$4 sm:$0xff]   ;;  %v1866_v22 = vld [vmem:[#allocation5 + $0x80] ss:$16 sps:$4 sm:$0xff]  }
  0x30   :  { %513 = vmatprep.subr.bf16.mxu0 %v1852_v12  ;;  %v1870_v23 = vld [vmem:[#allocation5 + $0xa4] ss:$16 sps:$4 sm:$0xff]   ;;  %v1863_v24 = vld [vmem:[#allocation5 + $0xc8] ss:$16 sps:$4 sm:$0xff]   ;;  %v1867_v25 = vld [vmem:[#allocation5 + $0xec] ss:$16 sps:$4 sm:$0xff]  }
  0x31   :  { %v1872_v26 = vld [vmem:[#allocation5 + $0xa0] ss:$16 sps:$4 sm:$0xff]   ;;  %v1876_v27 = vld [vmem:[#allocation5 + $0xc4] ss:$16 sps:$4 sm:$0xff]   ;;  %v1869_v28 = vld [vmem:[#allocation5 + $0xe8] ss:$16 sps:$4 sm:$0xff]  }
  0x32   :  { %595 = vmatpush1.bf16.msra.mxu1 %v1839_v7  ;;  %v1873_v29 = vld [vmem:[#allocation5 + $0x10c] ss:$16 sps:$4 sm:$0xff]   ;;  %v1878_v30 = vld [vmem:[#allocation5 + $0xc0] ss:$16 sps:$4 sm:$0xff]   ;;  %v1882_v31 = vld [vmem:[#allocation5 + $0xe4] ss:$16 sps:$4 sm:$0xff]  }
  0x33   :  { %596 = vmatprep.subr.bf16.mxu1 %v1843_v10  ;;  %514 = vmatpush1.bf16.msra.mxu0 %v1854_v14  ;;  %v1875_v32 = vld [vmem:[#allocation5 + $0x108] ss:$16 sps:$4 sm:$0xff]   ;;  %v1879_v33 = vld [vmem:[#allocation5 + $0x12c] ss:$16 sps:$4 sm:$0xff]   ;;  %v1884_v34 = vld [vmem:[#allocation5 + $0xe0] ss:$16 sps:$4 sm:$0xff]  }
  0x34   :  { %515 = vmatprep.subr.bf16.mxu0 %v1858_v15  ;;  %v1888_v35 = vld [vmem:[#allocation5 + $0x104] ss:$16 sps:$4 sm:$0xff]   ;;  %v1881_v36 = vld [vmem:[#allocation5 + $0x128] ss:$16 sps:$4 sm:$0xff]   ;;  %v1885_v37 = vld [vmem:[#allocation5 + $0x14c] ss:$16 sps:$4 sm:$0xff]  }
  0x35   :  { %v1890_v38 = vld [vmem:[#allocation5 + $0x100] ss:$16 sps:$4 sm:$0xff]   ;;  %v1894_v39 = vld [vmem:[#allocation5 + $0x124] ss:$16 sps:$4 sm:$0xff]   ;;  %v1887_v40 = vld [vmem:[#allocation5 + $0x148] ss:$16 sps:$4 sm:$0xff]  }
  0x36   :  { %597 = vmatpush1.bf16.msra.mxu1 %v1845_v11  ;;  %v1891_v41 = vld [vmem:[#allocation5 + $0x16c] ss:$16 sps:$4 sm:$0xff]   ;;  %v1896_v42 = vld [vmem:[#allocation5 + $0x120] ss:$16 sps:$4 sm:$0xff]   ;;  %v1900_v43 = vld [vmem:[#allocation5 + $0x144] ss:$16 sps:$4 sm:$0xff]   ;;  %v122_v11 = vlaneseq }
  0x37   :  { %598 = vmatprep.subr.bf16.mxu1 %v1849_v13  ;;  %516 = vmatpush1.bf16.msra.mxu0 %v1860_v18  ;;  %v1923_v44 = vld [vmem:[#allocation2 + $0x4] ss:$8 sps:$4 sm:$0xff]   ;;  %v1893_v45 = vld [vmem:[#allocation5 + $0x168] ss:$16 sps:$4 sm:$0xff]   ;;  %v1902_v47 = vld [vmem:[#allocation5 + $0x140] ss:$16 sps:$4 sm:$0xff]  }
  0x38   :  { %517 = vmatprep.subr.bf16.mxu0 %v1864_v19  ;;  %v1897_v46 = vld [vmem:[#allocation5 + $0x18c] ss:$16 sps:$4 sm:$0xff]   ;;  %v1906_v48 = vld [vmem:[#allocation5 + $0x164] ss:$16 sps:$4 sm:$0xff]   ;;  %622 = vmatprep.mubr.bf16.mxu1 %v1923_v44  ;;  %v1899_v49 = vld [vmem:[#allocation5 + $0x188] ss:$16 sps:$4 sm:$0xff]  }
  0x39   :  { %541 = vmatprep.mubr.bf16.mxu0 %v1923_v44  ;;  %v1908_v50 = vld [vmem:[#allocation5 + $0x160] ss:$16 sps:$4 sm:$0xff]   ;;  %v1903_v51 = vld [vmem:[#allocation5 + $0x1ac] ss:$16 sps:$4 sm:$0xff]   ;;  %v1912_v52 = vld [vmem:[#allocation5 + $0x184] ss:$16 sps:$4 sm:$0xff]  }
  0x3a   :  { %599 = vmatpush1.bf16.msra.mxu1 %v1851_v16  ;;  %v1905_v53 = vld [vmem:[#allocation5 + $0x1a8] ss:$16 sps:$4 sm:$0xff]   ;;  %v1914_v54 = vld [vmem:[#allocation5 + $0x180] ss:$16 sps:$4 sm:$0xff]   ;;  %v1909_v55 = vld [vmem:[#allocation5 + $0x1cc] ss:$16 sps:$4 sm:$0xff]  }
  0x3b   :  { %600 = vmatprep.subr.bf16.mxu1 %v1855_v17  ;;  %518 = vmatpush1.bf16.msra.mxu0 %v1866_v22  ;;  %v1918_v56 = vld [vmem:[#allocation5 + $0x1a4] ss:$16 sps:$4 sm:$0xff]   ;;  %v1911_v57 = vld [vmem:[#allocation5 + $0x1c8] ss:$16 sps:$4 sm:$0xff]   ;;  %v1920_v58 = vld [vmem:[#allocation5 + $0x1a0] ss:$16 sps:$4 sm:$0xff]  }
  0x3c   :  { %519 = vmatprep.subr.bf16.mxu0 %v1870_v23  ;;  %v1915_v59 = vld [vmem:[#allocation5 + $0x1ec] ss:$16 sps:$4 sm:$0xff]   ;;  %v1924_v60 = vld [vmem:[#allocation5 + $0x1c4] ss:$16 sps:$4 sm:$0xff]   ;;  %v1917_v61 = vld [vmem:[#allocation5 + $0x1e8] ss:$16 sps:$4 sm:$0xff]  }
  0x3d   :  { %v1926_v62 = vld [vmem:[#allocation5 + $0x1c0] ss:$16 sps:$4 sm:$0xff]   ;;  %v1927_v63 = vld [vmem:[#allocation5 + $0x1e4] ss:$16 sps:$4 sm:$0xff]   ;;  %v55_v7 = vld [vmem:[#allocation2 + $0x40] sm:$0xff]  ;;  %v123_v12 = vshrl.u32 %v122_v11, 7 }
  0x3e   :  { %601 = vmatpush1.bf16.msra.mxu1 %v1857_v20  ;;  %v1921_v0 = vld [vmem:[#allocation2] ss:$8 sps:$4 sm:$0xff]   ;;  %v1930_v2 = vld [vmem:[#allocation2 + $0x14] ss:$8 sps:$4 sm:$0xff]   ;;  %v1932_v3 = vld [vmem:[#allocation2 + $0x10] ss:$8 sps:$4 sm:$0xff]   ;;  %v1668_v9 = vcombine.high %v55_v7, %v55_v7  ;;  %v1667_v10 = vcombine.low %v55_v7, %v55_v7 }
  0x3f   :  { %602 = vmatprep.subr.bf16.mxu1 %v1861_v21  ;;  %520 = vmatpush1.bf16.msra.mxu0 %v1872_v26  ;;  %v1929_v1 = vld [vmem:[#allocation5 + $0x1e0] ss:$16 sps:$4 sm:$0xff]   ;;  %v1933_v4 = vld [vmem:[#allocation2 + $0x24] ss:$8 sps:$4 sm:$0xff]   ;;  %v1936_v6 = vld [vmem:[#allocation2 + $0x34] ss:$8 sps:$4 sm:$0xff]  }
  0x40   :  { %521 = vmatprep.subr.bf16.mxu0 %v1876_v27  ;;  %v1935_v5 = vld [vmem:[#allocation2 + $0x20] ss:$8 sps:$4 sm:$0xff]   ;;  %v1938_v8 = vld [vmem:[#allocation2 + $0x30] ss:$8 sps:$4 sm:$0xff]   ;;  %v132_v13 = vsub.s32 2, %v123_v12  ;;  %v136_v15 = vsub.s32 3, %v123_v12 }
  0x41   :  { %v120_v14 = vld [vmem:[%s2756_s2] sm:$0xf]  ;;  %v124_v16 = vsub.s32 0, %v123_v12  ;;  %v128_v17 = vsub.s32 1, %v123_v12  ;;  %vm2140_vm0 = vmmov 0   ;;  %vm973_vm1 = vcmask 195748  }
  0x42   :  { %603 = vmatpush1.bf16.msra.mxu1 %v1863_v24  ;;  %v2213_v18 = vrot.slane %v120_v14, %v132_v13  ;;  %v2215_v20 = vrot.slane %v120_v14, %v136_v15  ;;  %vm951_vm2 = vcmask 158848   ;;  %vm794_vm3 = vcmask 64548   ;;  %s2141_s2 = smov 108   ;;  %s2142_s17 = smov 112  }
  0x43   :  { %604 = vmatprep.subr.bf16.mxu1 %v1867_v25  ;;  %522 = vmatpush1.bf16.msra.mxu0 %v1878_v30  ;;  %v2217_v22 = vrot.slane %v120_v14, %v124_v16  ;;  %v2219_v24 = vrot.slane %v120_v14, %v128_v17  ;;  %vm781_vm4 = vcmask 27648   ;;  %vm817_vm5 = vcmask 93248   ;;  %s2143_s18 = smov 124   ;;  %s2144_s19 = smov 120  }
  0x44   :  { %523 = vmatprep.subr.bf16.mxu0 %v1882_v31  ;;  %vm1249_vm6 = vcmask 130112   ;;  %vm934_vm7 = vcmask 130148   ;;  %vm1428_vm8 = vcmask 261312   ;;  %vm854_vm9 = vcmask 64512   ;;  %s2145_s20 = smov 104   ;;  %s2146_s21 = smov 88  }
  0x45   :  { %vm1445_vm10 = vcmask 326912   ;;  %vm1466_vm11 = vcmask 392512   ;;  %vm1270_vm12 = vcmask 195712   ;;  %s2147_s22 = smov 116   ;;  %vm805_vm13 = vcmask 31748   ;;  %s2148_s23 = smov 96  }
  0x46   :  { %605 = vmatpush1.bf16.msra.mxu1 %v1869_v28  ;;  %s2149_s24 = smov 4   ;;  %s2150_s25 = smov 12   ;;  %vm852_vm14 = vcmask 31744   ;;  %vm856_vm15 = vcmask 97280  }
  0x47   :  { %606 = vmatprep.subr.bf16.mxu1 %v1873_v29  ;;  %524 = vmatpush1.bf16.msra.mxu0 %v1884_v34  ;;  %s2151_s27 = smov 24   ;;  %s2152_s28 = smov 56  }
  0x48   :  { %525 = vmatprep.subr.bf16.mxu0 %v1888_v35  ;;  %s2153_s29 = smov 32   ;;  %s2154_s30 = smov 40  }
  0x49   :  { %s2155_s5 = smov 48   ;;  %s2157_s6 = smov [#allocation7]  }
  0x4a   :  { %607 = vmatpush1.bf16.msra.mxu1 %v1875_v32  ;;  %s1635_s7 = sshll.u32 %s2157_s6, 4  ;;  %s1636_s7 = int_to_ptr.vmem [resolvable:$true] %s1635_s7 }
  0x4b   :  { %608 = vmatprep.subr.bf16.mxu1 %v1879_v33  ;;  %526 = vmatpush1.bf16.msra.mxu0 %v1890_v38  ;;  %s2081_s8 = scalar_lea.vmem %s1636_s7, 32  ;;  %p2086_p3 = scmp.lt.s32.totalorder %s1636_s7, %s1636_s7 }
  0x4c   :  { %527 = vmatprep.subr.bf16.mxu0 %v1894_v39  ;;  %p2082_p2 = scmp.ne.s32.totalorder %s1636_s7, %s2081_s8  ;;  %p2087_p4 = scmp.lt.s32.totalorder %s2081_s8, %s2081_s8 }
  0x4e   :  { %609 = vmatpush1.bf16.msra.mxu1 %v1881_v36  ;;  %p2088_p5 = por %p2087_p4, %p2086_p3 }
  0x4f   :  { %610 = vmatprep.subr.bf16.mxu1 %v1885_v37  ;;  %528 = vmatpush1.bf16.msra.mxu0 %v1896_v42 }
  0x50   :  { %529 = vmatprep.subr.bf16.mxu0 %v1900_v43  ;;  %p2089_p6 = pnand %p2088_p5, %p2082_p2 }
  0x52   :  { %611 = vmatpush1.bf16.msra.mxu1 %v1887_v40 }
  0x53   :  { %612 = vmatprep.subr.bf16.mxu1 %v1891_v41  ;;  %530 = vmatpush1.bf16.msra.mxu0 %v1902_v47 }
  0x54   :  { %531 = vmatprep.subr.bf16.mxu0 %v1906_v48 }
  0x56   :  { %613 = vmatpush1.bf16.msra.mxu1 %v1893_v45 }
  0x57   :  { %614 = vmatprep.subr.bf16.mxu1 %v1897_v46  ;;  %532 = vmatpush1.bf16.msra.mxu0 %v1908_v50 }
  0x58   :  { %533 = vmatprep.subr.bf16.mxu0 %v1912_v52 }
  0x5a   :  { %615 = vmatpush1.bf16.msra.mxu1 %v1899_v49 }
  0x5b   :  { %616 = vmatprep.subr.bf16.mxu1 %v1903_v51  ;;  %534 = vmatpush1.bf16.msra.mxu0 %v1914_v54 }
  0x5c   :  { %535 = vmatprep.subr.bf16.mxu0 %v1918_v56 }
  0x5e   :  { %617 = vmatpush1.bf16.msra.mxu1 %v1905_v53 }
  0x5f   :  { %618 = vmatprep.subr.bf16.mxu1 %v1909_v55  ;;  %536 = vmatpush1.bf16.msra.mxu0 %v1920_v58 }
  0x60   :  { %537 = vmatprep.subr.bf16.mxu0 %v1924_v60  ;;  %v2139_v60 = vmov 0.0  }
  0x62   :  { %619 = vmatpush1.bf16.msra.mxu1 %v1911_v57 }
  0x63   :  { %620 = vmatprep.subr.bf16.mxu1 %v1915_v59  ;;  %538 = vmatpush1.bf16.msra.mxu0 %v1926_v62 }
  0x64   :  { %539 = vmatprep.subr.bf16.mxu0 %v1927_v63 }
  0x66   :  { %621 = vmatpush1.bf16.msra.mxu1 %v1917_v61 }
  0x67   :  { %540 = vmatpush1.bf16.msra.mxu0 %v1929_v1 }
  0x69   :  { %623 = vmatmul.mubr.bf16.vlgmr.msra.gmra.mrb[0].mxu1 %v1921_v0 }
  0x6a   :  { %632 = vmatprep.mubr.bf16.mxu1 %v1930_v2  ;;  %542 = vmatmul.mubr.bf16.vlgmr.msra.gmra.mrb[0].mxu0 %v1921_v0 }
  0x6b   :  { %551 = vmatprep.mubr.bf16.mxu0 %v1930_v2 }
  0x71   :  { %633 = vmatmul.mubr.bf16.gmra.mrb[4].mxu1 %v1932_v3 }
  0x72   :  { %642 = vmatprep.mubr.bf16.mxu1 %v1933_v4  ;;  %552 = vmatmul.mubr.bf16.gmra.mrb[4].mxu0 %v1932_v3 }
  0x73   :  { %561 = vmatprep.mubr.bf16.mxu0 %v1933_v4 }
  0x79   :  { %643 = vmatmul.mubr.bf16.gmra.mrb[8].mxu1 %v1935_v5 }
  0x7a   :  { %652 = vmatprep.mubr.bf16.mxu1 %v1936_v6  ;;  %562 = vmatmul.mubr.bf16.gmra.mrb[8].mxu0 %v1935_v5 }
  0x7b   :  { %571 = vmatprep.mubr.bf16.mxu0 %v1936_v6 }
  0x81   :  { %653 = vmatmul.mubr.bf16.gmra.mrb[12].mxu1 %v1938_v8 }
  0x82   :  { %662 = vmatprep.mubr.bf16.mxu1 %v1668_v9  ;;  %572 = vmatmul.mubr.bf16.gmra.mrb[12].mxu0 %v1938_v8 }
  0x83   :  { %581 = vmatprep.mubr.bf16.mxu0 %v1668_v9 }
  0x89   :  { %663 = vmatmul.mubr.bf16.gmra.mrb[16].mxu1 %v1667_v10 }
  0x8a   :  { %582 = vmatmul.mubr.bf16.gmra.mrb[16].mxu0 %v1667_v10 }
 0x13c   :  { %v624_v19 = vpop.f32.mrb[0].mxu1 }
 0x13d   :  { %v626_v21 = vpop.f32.mrb[1].mxu1  ;;  %v625_v25 = vadd.f32 %v624_v19, %v2213_v18  ;;  %v543_v30 = vpop.f32.mrb[0].mxu0 }
 0x13e   :  { %v628_v23 = vpop.f32.mrb[2].mxu1  ;;  %v627_v28 = vadd.f32 %v626_v21, %v2215_v20  ;;  %v544_v32 = vadd.f32 %v543_v30, %v2217_v22  ;;  %v545_v33 = vpop.f32.mrb[1].mxu0 }
 0x13f   :  { %v629_v26 = vadd.f32 %v628_v23, %v2213_v18  ;;  %v630_v27 = vpop.f32.mrb[3].mxu1  ;;  %v546_v35 = vadd.f32 %v545_v33, %v2219_v24  ;;  %v547_v36 = vpop.f32.mrb[2].mxu0 }
 0x140   :  { %v631_v29 = vadd.f32 %v630_v27, %v2215_v20  ;;  %v548_v37 = vadd.f32 %v547_v36, %v2217_v22  ;;  %v549_v38 = vpop.f32.mrb[3].mxu0 }
 0x141   :  { %v673_v31 = vpack.c.bf16 %v629_v26, %v625_v25  ;;  %v550_v40 = vadd.f32 %v549_v38, %v2219_v24 }
 0x142   :  { %v728_v34 = vpack.c.bf16 %v631_v29, %v627_v28  ;;  %v671_v43 = vpack.c.bf16 %v548_v37, %v544_v32 }
 0x143   :  { %1753 = vmatprep.subr.bf16.mxu0 %v673_v31  ;;  %v726_v45 = vpack.c.bf16 %v550_v40, %v546_v35 }
 0x144   :  { %1754 = vmatpush3.bf16.xpose.msra.mxu0 %v673_v31  ;;  %1761 = vmatprep.subr.bf16.mxu1 %v728_v34  ;;  %v634_v39 = vpop.f32.mrb[4].mxu1 }
 0x145   :  { %1762 = vmatpush3.bf16.xpose.msra.mxu1 %v728_v34  ;;  %v635_v41 = vadd.f32 %v634_v39, %v2213_v18  ;;  %v636_v42 = vpop.f32.mrb[5].mxu1  ;;  %1757 = vmatprep.mubr.bf16.mxu0 %v671_v43  ;;  %v553_v50 = vpop.f32.mrb[4].mxu0 }
 0x146   :  { %v637_v44 = vadd.f32 %v636_v42, %v2215_v20  ;;  %v638_v46 = vpop.f32.mrb[6].mxu1  ;;  %1765 = vmatprep.mubr.bf16.mxu1 %v726_v45  ;;  %v555_v51 = vpop.f32.mrb[5].mxu0  ;;  %v554_v53 = vadd.f32 %v553_v50, %v2217_v22 }
 0x147   :  { %v674_v47 = vpack.c.bf16 %v635_v41, %v635_v41  ;;  %v640_v48 = vpop.f32.mrb[7].mxu1  ;;  %v557_v52 = vpop.f32.mrb[6].mxu0  ;;  %v556_v56 = vadd.f32 %v555_v51, %v2219_v24  ;;  %v639_v57 = vadd.f32 %v638_v46, %v2213_v18 }
 0x148   :  { %v729_v49 = vpack.c.bf16 %v637_v44, %v637_v44  ;;  %v559_v54 = vpop.f32.mrb[7].mxu0  ;;  %v641_v61 = vadd.f32 %v640_v48, %v2215_v20  ;;  %v672_v0 = vpack.c.bf16 %v554_v53, %v554_v53  ;;  %v2240_v3 = vadd.f32 %v557_v52, %v2217_v22 }
 0x149   :  { %1755 = vmatprep.subr.bf16.mxu0 %v674_v47  ;;  %v727_v4 = vpack.c.bf16 %v556_v56, %v556_v56  ;;  %v2243_v6 = vadd.f32 %v559_v54, %v2219_v24 }
 0x14a   :  { %1763 = vmatprep.subr.bf16.mxu1 %v729_v49 }
 0x14c   :  { %1756 = vmatpush3.bf16.xpose.msra.mxu0 %v674_v47  ;;  %v644_v55 = vpop.f32.mrb[8].mxu1 }
 0x14d   :  { %1764 = vmatpush3.bf16.xpose.msra.mxu1 %v729_v49  ;;  %v645_v58 = vadd.f32 %v644_v55, %v2213_v18  ;;  %v646_v59 = vpop.f32.mrb[9].mxu1  ;;  %1769 = vmatprep.subr.bf16.mxu0 %v2139_v60  ;;  %v563_v7 = vpop.f32.mrb[8].mxu0 }
 0x14e   :  { %v647_v62 = vadd.f32 %v646_v59, %v2215_v20  ;;  %1787 = vmatprep.subr.bf16.mxu1 %v2139_v60  ;;  %v648_v63 = vpop.f32.mrb[10].mxu1  ;;  %v564_v8 = vadd.f32 %v563_v7, %v2217_v22  ;;  %v565_v9 = vpop.f32.mrb[9].mxu0 }
 0x14f   :  { %v1102_v1 = vpack.c.bf16 %v645_v58, %v639_v57  ;;  %v650_v2 = vpop.f32.mrb[11].mxu1  ;;  %v566_v10 = vadd.f32 %v565_v9, %v2219_v24  ;;  %v567_v11 = vpop.f32.mrb[10].mxu0  ;;  %v649_v12 = vadd.f32 %v648_v63, %v2213_v18 }
 0x150   :  { %v1171_v5 = vpack.c.bf16 %v647_v62, %v641_v61  ;;  %v1099_v13 = vpack.c.bf16 %v564_v8, %v2240_v3  ;;  %v569_v14 = vpop.f32.mrb[11].mxu0  ;;  %v651_v15 = vadd.f32 %v650_v2, %v2215_v20  ;;  %v568_v28 = vadd.f32 %v567_v11, %v2217_v22 }
 0x151   :  { %v1168_v17 = vpack.c.bf16 %v566_v10, %v2243_v6  ;;  %v570_v30 = vadd.f32 %v569_v14, %v2219_v24 }
 0x153   :  { %1758 = vmatmul.mubr.bf16.vlgmr.msra.gmra.mrb[20].mxu0 %v672_v0 }
 0x154   :  { %1770 = vmatpush3.bf16.xpose.msra.mxu0 %v1102_v1  ;;  %1766 = vmatmul.mubr.bf16.vlgmr.msra.gmra.mrb[20].mxu1 %v727_v4  ;;  %v654_v16 = vpop.f32.mrb[12].mxu1 }
 0x155   :  { %1788 = vmatpush3.bf16.xpose.msra.mxu1 %v1171_v5  ;;  %v655_v19 = vadd.f32 %v654_v16, %v2213_v18  ;;  %v656_v21 = vpop.f32.mrb[13].mxu1  ;;  %1771 = vmatprep.subr.bf16.mxu0 %v2139_v60  ;;  %v573_v31 = vpop.f32.mrb[12].mxu0 }
 0x156   :  { %v657_v23 = vadd.f32 %v656_v21, %v2215_v20  ;;  %1789 = vmatprep.subr.bf16.mxu1 %v2139_v60  ;;  %v658_v25 = vpop.f32.mrb[14].mxu1  ;;  %1775 = vmatprep.mubr.msk.bf16.mxu0 %vm2140_vm0, %v2139_v60  ;;  %v574_v32 = vadd.f32 %v573_v31, %v2217_v22  ;;  %v575_v33 = vpop.f32.mrb[13].mxu0 }
 0x157   :  { %v1103_v26 = vpack.c.bf16 %v655_v19, %v649_v12  ;;  %v660_v27 = vpop.f32.mrb[15].mxu1  ;;  %1793 = vmatprep.mubr.msk.bf16.mxu1 %vm2140_vm0, %v2139_v60  ;;  %v576_v34 = vadd.f32 %v575_v33, %v2219_v24  ;;  %v577_v35 = vpop.f32.mrb[14].mxu0  ;;  %v659_v36 = vadd.f32 %v658_v25, %v2213_v18 }
 0x158   :  { %v1172_v29 = vpack.c.bf16 %v657_v23, %v651_v15  ;;  %v1100_v37 = vpack.c.bf16 %v574_v32, %v568_v28  ;;  %v579_v38 = vpop.f32.mrb[15].mxu0  ;;  %v661_v39 = vadd.f32 %v660_v27, %v2215_v20  ;;  %v578_v47 = vadd.f32 %v577_v35, %v2217_v22 }
 0x159   :  { %v1169_v41 = vpack.c.bf16 %v576_v34, %v570_v30  ;;  %v580_v50 = vadd.f32 %v579_v38, %v2219_v24 }
 0x15c   :  { %1772 = vmatpush3.bf16.xpose.msra.mxu0 %v1103_v26  ;;  %v664_v40 = vpop.f32.mrb[16].mxu1 }
 0x15d   :  { %1790 = vmatpush3.bf16.xpose.msra.mxu1 %v1172_v29  ;;  %v665_v42 = vadd.f32 %v664_v40, %v2213_v18  ;;  %v666_v43 = vpop.f32.mrb[17].mxu1  ;;  %1773 = vmatprep.subr.bf16.mxu0 %v2139_v60  ;;  %v583_v51 = vpop.f32.mrb[16].mxu0 }
 0x15e   :  { %v667_v44 = vadd.f32 %v666_v43, %v2215_v20  ;;  %1791 = vmatprep.subr.bf16.mxu1 %v2139_v60  ;;  %v668_v45 = vpop.f32.mrb[18].mxu1  ;;  %v584_v52 = vadd.f32 %v583_v51, %v2217_v22  ;;  %v585_v53 = vpop.f32.mrb[17].mxu0 }
 0x15f   :  { %v1104_v46 = vpack.c.bf16 %v665_v42, %v659_v36  ;;  %v669_v48 = vpop.f32.mrb[19].mxu1  ;;  %v586_v18 = vadd.f32 %v585_v53, %v2219_v24  ;;  %v587_v54 = vpop.f32.mrb[18].mxu0 }
 0x160   :  { %v1173_v49 = vpack.c.bf16 %v667_v44, %v661_v39  ;;  %v1101_v55 = vpack.c.bf16 %v584_v52, %v578_v47  ;;  %v588_v56 = vpop.f32.mrb[19].mxu0 }
 0x161   :  { %v1170_v20 = vpack.c.bf16 %v586_v18, %v580_v50 }
 0x164   :  { %1774 = vmatpush3.bf16.xpose.msra.mxu0 %v1104_v46 }
 0x165   :  { %1792 = vmatpush3.bf16.xpose.msra.mxu1 %v1173_v49 }
 0x16b   :  { %1776 = vmatmul.mubr.bf16.vlgmr.msra.gmra.mrb[24].mxu0 %v1099_v13 }
 0x16c   :  { %1794 = vmatmul.mubr.bf16.vlgmr.msra.gmra.mrb[24].mxu1 %v1168_v17  ;;  %1779 = vmatprep.mubr.msk.bf16.mxu0 %vm2140_vm0, %v2139_v60 }
 0x16d   :  { %1797 = vmatprep.mubr.msk.bf16.mxu1 %vm2140_vm0, %v2139_v60 }
 0x173   :  { %1780 = vmatmul.mubr.bf16.gmra.mrb[28].mxu0 %v1100_v37 }
 0x174   :  { %1798 = vmatmul.mubr.bf16.gmra.mrb[28].mxu1 %v1169_v41  ;;  %1783 = vmatprep.mubr.msk.bf16.mxu0 %vm2140_vm0, %v2139_v60 }
 0x175   :  { %1801 = vmatprep.mubr.msk.bf16.mxu1 %vm2140_vm0, %v2139_v60  ;;  %vm932_vm0 = vcmask 130048  }
 0x17b   :  { %1784 = vmatmul.mubr.bf16.gmra.mrb[32].mxu0 %v1101_v55 }
 0x17c   :  { %1802 = vmatmul.mubr.bf16.gmra.mrb[32].mxu1 %v1170_v20 }
 0x226   :  { %v1759_v22 = vpop.f32.mrb[20].mxu0 }
 0x227   :  { %v2281_v24 = vmul.f32 0.088388346, %v1759_v22  ;;  %v709_v57 = vpop.f32.mrb[21].mxu0  ;;  %v1767_v58 = vpop.f32.mrb[20].mxu1 }
 0x228   :  { %v764_v59 = vpop.f32.mrb[21].mxu1  ;;  %v1760_v61 = vpop.f32.mrb[22].mxu0  ;;  %v2287_v0 = vmul.f32 0.088388346, %v709_v57  ;;  %v2289_v3 = vmul.f32 0.088388346, %v1767_v58 }
 0x229   :  { %v974_v62 = vsel %vm973_vm1, %v2281_v24, -inf  ;;  %v952_v63 = vsel %vm951_vm2, %v2281_v24, -inf  ;;  %v712_v60 = vpop.f32.mrb[23].mxu0  ;;  %v1768_v1 = vpop.f32.mrb[22].mxu1  ;;  %v2297_v7 = vmul.f32 0.088388346, %v764_v59 }
 0x22a   :  { %975 = vmax.xlane.f32.xlu1 %v974_v62  ;;  %953 = vmax.xlane.f32.xlu0 %v952_v63  ;;  %v767_v2 = vpop.f32.mrb[23].mxu1  ;;  %v795_v4 = vsel %vm794_vm3, %v2287_v0, -inf  ;;  %v782_v5 = vsel %vm781_vm4, %v2287_v0, -inf  ;;  %v1028_v6 = vsel %vm951_vm2, %v2289_v3, -inf  ;;  %v1049_v8 = vsel %vm973_vm1, %v2289_v3, -inf }
 0x22b   :  { %v858_v9 = vsel %vm781_vm4, %v2297_v7, -inf  ;;  %v2303_v10 = vmul.f32 0.088388346, %v712_v60  ;;  %v870_v11 = vsel %vm794_vm3, %v2297_v7, -inf  ;;  %v2315_v28 = vmul.f32 0.088388346, %v767_v2 }
 0x22c   :  { %vm1323_vm1 = vcmask 195584   ;;  %vm1325_vm2 = vcmask 261120   ;;  %vm1327_vm3 = vcmask 326656  }
 0x22d   :  { %v818_v23 = vsel %vm817_vm5, %v2303_v10, -inf  ;;  %v935_v29 = vsel %vm934_vm7, %v2303_v10, -inf  ;;  %v891_v37 = vsel %vm817_vm5, %v2315_v28, -inf  ;;  %v1012_v44 = vsel %vm934_vm7, %v2315_v28, -inf }
 0x22e   :  { %796 = vmax.xlane.f32.xlu1 %v795_v4  ;;  %783 = vmax.xlane.f32.xlu0 %v782_v5  ;;  %vm1331_vm5 = vcmask 457728   ;;  %vm1097_vm7 = vcmask 254976  }
 0x232   :  { %1029 = vmax.xlane.f32.xlu1 %v1028_v6 }
 0x236   :  { %1050 = vmax.xlane.f32.xlu1 %v1049_v8 }
 0x23a   :  { %859 = vmax.xlane.f32.xlu1 %v858_v9 }
 0x23e   :  { %871 = vmax.xlane.f32.xlu1 %v870_v11  ;;  %v1139_v12 = vpop.f32.mrb[24].mxu0 }
 0x23f   :  { %v1777_v13 = vpop.f32.mrb[25].mxu0  ;;  %v1208_v14 = vpop.f32.mrb[24].mxu1  ;;  %v2328_v43 = vmul.f32 0.088388346, %v1139_v12 }
 0x240   :  { %v1142_v15 = vpop.f32.mrb[26].mxu0  ;;  %v1795_v16 = vpop.f32.mrb[25].mxu1  ;;  %v2335_v52 = vmul.f32 0.088388346, %v1208_v14 }
 0x241   :  { %v2307_v17 = vmul.f32 0.088388346, %v1142_v15  ;;  %v1778_v19 = vpop.f32.mrb[27].mxu0  ;;  %v1211_v21 = vpop.f32.mrb[26].mxu1  ;;  %v1237_v53 = vsel %vm854_vm9, %v2328_v43, -inf }
 0x242   :  { %v1796_v25 = vpop.f32.mrb[27].mxu1  ;;  %819 = vmax.xlane.f32.xlu1 %v818_v23  ;;  %v2311_v26 = vmul.f32 0.088388346, %v1211_v21  ;;  %v1333_v57 = vsel %vm854_vm9, %v2335_v52, -inf }
 0x243   :  { %v1250_v27 = vsel %vm1249_vm6, %v2307_v17, -inf }
 0x244   :  { %1251 = vmax.xlane.f32.xlu0 %v1250_v27  ;;  %v1345_v32 = vsel %vm1249_vm6, %v2311_v26, -inf  ;;  %vm1095_vm6 = vcmask 1040384  }
 0x246   :  { %v1147_v30 = vpop.f32.mrb[28].mxu0  ;;  %936 = vmax.xlane.f32.xlu1 %v935_v29 }
 0x247   :  { %v1781_v31 = vpop.f32.mrb[29].mxu0  ;;  %v1216_v33 = vpop.f32.mrb[28].mxu1  ;;  %v2343_v22 = vmul.f32 0.088388346, %v1147_v30 }
 0x248   :  { %1346 = vmax.xlane.f32.xlu0 %v1345_v32  ;;  %v1150_v34 = vpop.f32.mrb[30].mxu0  ;;  %v1799_v35 = vpop.f32.mrb[29].mxu1  ;;  %v2349_v59 = vmul.f32 0.088388346, %v1216_v33 }
 0x249   :  { %v2321_v36 = vmul.f32 0.088388346, %v1150_v34  ;;  %v1219_v38 = vpop.f32.mrb[30].mxu1  ;;  %v1782_v39 = vpop.f32.mrb[31].mxu0  ;;  %v1271_v61 = vsel %vm1270_vm12, %v2343_v22, -inf }
 0x24a   :  { %892 = vmax.xlane.f32.xlu1 %v891_v37  ;;  %v2325_v40 = vmul.f32 0.088388346, %v1219_v38  ;;  %v1800_v41 = vpop.f32.mrb[31].mxu1  ;;  %v1365_v63 = vsel %vm1270_vm12, %v2349_v59, -inf }
 0x24b   :  { %v1429_v42 = vsel %vm1428_vm8, %v2321_v36, -inf }
 0x24c   :  { %1430 = vmax.xlane.f32.xlu0 %v1429_v42  ;;  %v1525_v45 = vsel %vm1428_vm8, %v2325_v40, -inf }
 0x24e   :  { %1013 = vmax.xlane.f32.xlu1 %v1012_v44  ;;  %v1155_v46 = vpop.f32.mrb[32].mxu0 }
 0x24f   :  { %v1224_v47 = vpop.f32.mrb[32].mxu1  ;;  %v1785_v48 = vpop.f32.mrb[33].mxu0  ;;  %v2352_v62 = vmul.f32 0.088388346, %v1155_v46 }
 0x250   :  { %v2333_v49 = vmul.f32 0.088388346, %v1224_v47  ;;  %1526 = vmax.xlane.f32.xlu0 %v1525_v45  ;;  %v1803_v50 = vpop.f32.mrb[33].mxu1  ;;  %v1158_v51 = vpop.f32.mrb[34].mxu0 }
 0x251   :  { %v1227_v18 = vpop.f32.mrb[34].mxu1  ;;  %v1786_v54 = vpop.f32.mrb[35].mxu0  ;;  %v2355_v60 = vmul.f32 0.088388346, %v1158_v51  ;;  %v1446_v1 = vsel %vm1445_vm10, %v2352_v62, -inf }
 0x252   :  { %1238 = vmax.xlane.f32.xlu1 %v1237_v53  ;;  %v2339_v55 = vmul.f32 0.088388346, %v1227_v18  ;;  %v1541_v56 = vsel %vm1445_vm10, %v2333_v49, -inf  ;;  %v1804_v20 = vpop.f32.mrb[35].mxu1 }
 0x253   :  { %v1467_v2 = vsel %vm1466_vm11, %v2355_v60, -inf }
 0x254   :  { %1542 = vmax.xlane.f32.xlu0 %v1541_v56  ;;  %v1561_v58 = vsel %vm1466_vm11, %v2339_v55, -inf }
 0x256   :  { %1334 = vmax.xlane.f32.xlu1 %v1333_v57 }
 0x258   :  { %1562 = vmax.xlane.f32.xlu0 %v1561_v58 }
 0x25a   :  { %1272 = vmax.xlane.f32.xlu1 %v1271_v61 }
 0x25e   :  { %1366 = vmax.xlane.f32.xlu1 %v1365_v63 }
 0x262   :  { %1447 = vmax.xlane.f32.xlu1 %v1446_v1 }
 0x266   :  { %1468 = vmax.xlane.f32.xlu1 %v1467_v2 }
 0x2b7   :  { %v976_v4 = vpop.xlane.xlu1 %975  ;;  %v954_v5 = vpop.xlane.xlu0 %953 }
 0x2b8   :  { %v977_v6 = vsub.f32 %v2281_v24, %v976_v4  ;;  %v955_v8 = vsub.f32 %v2281_v24, %v954_v5 }
 0x2ba   :  { %v978_v9 = vmul.f32 1.442695, %v977_v6  ;;  %v956_v11 = vmul.f32 1.442695, %v955_v8 }
 0x2bb   :  { %v797_v12 = vpop.xlane.xlu1 %796 }
 0x2bc   :  { %1941 = vpow2.f32 %v978_v9  ;;  %v798_v13 = vsub.f32 %v2287_v0, %v797_v12 }
 0x2bd   :  { %1943 = vpow2.f32 %v956_v11 }
 0x2be   :  { %v799_v14 = vmul.f32 1.442695, %v798_v13 }
 0x2bf   :  { %v1030_v15 = vpop.xlane.xlu1 %1029 }
 0x2c0   :  { %1945 = vpow2.f32 %v799_v14  ;;  %v1031_v16 = vsub.f32 %v2289_v3, %v1030_v15 }
 0x2c2   :  { %v1032_v19 = vmul.f32 1.442695, %v1031_v16 }
 0x2c3   :  { %v1051_v21 = vpop.xlane.xlu1 %1050 }
 0x2c4   :  { %1947 = vpow2.f32 %v1032_v19  ;;  %v1052_v23 = vsub.f32 %v2289_v3, %v1051_v21  ;;  %v784_v3 = vpop.xlane.xlu0 %783 }
 0x2c5   :  { %v785_v47 = vsub.f32 %v2287_v0, %v784_v3 }
 0x2c6   :  { %v2366_v25 = vpop.eup %1941  ;;  %v1053_v24 = vmul.f32 1.442695, %v1052_v23 }
 0x2c7   :  { %v2368_v27 = vpop.eup %1943  ;;  %v2370_v29 = vpop.xlane.xlu1 %859  ;;  %981 = vrot.lane.b32.xlu0 %v2366_v25, %s2141_s2  ;;  %v786_v51 = vmul.f32 1.442695, %v785_v47 }
 0x2c8   :  { %1949 = vpow2.f32 %v1053_v24  ;;  %959 = vrot.lane.b32.xlu1 %v2368_v27, %s2142_s17  ;;  %v861_v16 = vsub.f32 %v2297_v7, %v2370_v29 }
 0x2ca   :  { %v2375_v30 = vpop.eup %1945  ;;  %v862_v19 = vmul.f32 1.442695, %v861_v16 }
 0x2cb   :  { %v872_v31 = vpop.xlane.xlu1 %871 }
 0x2cc   :  { %802 = vrot.lane.b32.xlu1 %v2375_v30, %s2143_s18 }
 0x2ce   :  { %v2379_v32 = vpop.eup %1947 }
 0x2cf   :  { %v820_v33 = vpop.xlane.xlu1 %819 }
 0x2d0   :  { %1035 = vrot.lane.b32.xlu1 %v2379_v32, %s2142_s17  ;;  %v821_v9 = vsub.f32 %v2303_v10, %v820_v33 }
 0x2d1   :  { %v1252_v34 = vpop.xlane.xlu0 %1251 }
 0x2d2   :  { %v2383_v35 = vpop.eup %1949  ;;  %v1253_v37 = vsub.f32 %v2307_v17, %v1252_v34 }
 0x2d3   :  { %1056 = vrot.lane.b32.xlu0 %v2383_v35, %s2141_s2  ;;  %v2387_v38 = vpop.xlane.xlu1 %936 }
 0x2d4   :  { %v1254_v39 = vmul.f32 1.442695, %v1253_v37  ;;  %v938_v24 = vsub.f32 %v2303_v10, %v2387_v38 }
 0x2d5   :  { %v1347_v41 = vpop.xlane.xlu0 %1346 }
 0x2d6   :  { %1951 = vpow2.f32 %v1254_v39  ;;  %v1348_v42 = vsub.f32 %v2311_v26, %v1347_v41 }
 0x2d7   :  { %v2390_v44 = vpop.xlane.xlu1 %892 }
 0x2d8   :  { %v1349_v45 = vmul.f32 1.442695, %v1348_v42  ;;  %v894_v3 = vsub.f32 %v2315_v28, %v2390_v44 }
 0x2d9   :  { %v1431_v48 = vpop.xlane.xlu0 %1430 }
 0x2da   :  { %1953 = vpow2.f32 %v1349_v45  ;;  %v1432_v20 = vsub.f32 %v2321_v36, %v1431_v48  ;;  %v873_v36 = vsub.f32 %v2297_v7, %v872_v31  ;;  %v939_v31 = vmul.f32 1.442695, %v938_v24 }
 0x2db   :  { %v2392_v46 = vpop.xlane.xlu1 %1013  ;;  %1955 = vpow2.f32 %v786_v51  ;;  %v895_v33 = vmul.f32 1.442695, %v894_v3 }
 0x2dc   :  { %v1433_v63 = vmul.f32 1.442695, %v1432_v20  ;;  %v874_v8 = vmul.f32 1.442695, %v873_v36  ;;  %v1015_v7 = vsub.f32 %v2315_v28, %v2392_v46 }
 0x2dd   :  { %v1527_v18 = vpop.xlane.xlu0 %1526 }
 0x2de   :  { %v1528_v1 = vsub.f32 %v2325_v40, %v1527_v18  ;;  %v822_v40 = vmul.f32 1.442695, %v821_v9  ;;  %v1016_v29 = vmul.f32 1.442695, %v1015_v7 }
 0x2df   :  { %v2395_v50 = vpop.xlane.xlu1 %1238 }
 0x2e0   :  { %v2397_v17 = vpop.eup %1951  ;;  %v1529_v5 = vmul.f32 1.442695, %v1528_v1  ;;  %v1240_v28 = vsub.f32 %v2328_v43, %v2395_v50 }
 0x2e1   :  { %1257 = vrot.lane.b32.xlu1 %v2397_v17, %s2144_s19  ;;  %v2409_v54 = vpop.xlane.xlu0 %1542 }
 0x2e2   :  { %v1241_v38 = vmul.f32 1.442695, %v1240_v28  ;;  %v1544_v20 = vsub.f32 %v2333_v49, %v2409_v54 }
 0x2e3   :  { %v2401_v53 = vpop.xlane.xlu1 %1334 }
 0x2e4   :  { %v2403_v26 = vpop.eup %1953  ;;  %v1336_v39 = vsub.f32 %v2335_v52, %v2401_v53 }
 0x2e5   :  { %1352 = vrot.lane.b32.xlu1 %v2403_v26, %s2144_s19  ;;  %v2413_v58 = vpop.eup %1955  ;;  %v1563_v2 = vpop.xlane.xlu0 %1562 }
 0x2e6   :  { %v788_v4 = vsel %vm781_vm4, %v2413_v58, 0.0  ;;  %v1564_v6 = vsub.f32 %v2339_v55, %v1563_v2  ;;  %v1337_v41 = vmul.f32 1.442695, %v1336_v39 }
 0x2e7   :  { %v2407_v0 = vpop.xlane.xlu1 %1272 }
 0x2e8   :  { %v1274_v52 = vsub.f32 %v2343_v22, %v2407_v0 }
 0x2ea   :  { %v1275_v53 = vmul.f32 1.442695, %v1274_v52 }
 0x2eb   :  { %v1367_v56 = vpop.xlane.xlu1 %1366 }
 0x2ec   :  { %v1368_v57 = vsub.f32 %v2349_v59, %v1367_v56  ;;  %v1565_v59 = vmul.f32 1.442695, %v1564_v6 }
 0x2ee   :  { %v1369_v61 = vmul.f32 1.442695, %v1368_v57 }
 0x2ef   :  { %v1448_v42 = vpop.xlane.xlu1 %1447 }
 0x2f0   :  { %1957 = vpow2.f32 %v1369_v61  ;;  %v1449_v18 = vsub.f32 %v2352_v62, %v1448_v42 }
 0x2f1   :  { %1959 = vpow2.f32 %v1433_v63  ;;  %v1545_v63 = vmul.f32 1.442695, %v1544_v20 }
 0x2f2   :  { %789 = vadd.xlane.f32.xlu0 %v788_v4  ;;  %1961 = vpow2.f32 %v1529_v5  ;;  %v1450_v57 = vmul.f32 1.442695, %v1449_v18 }
 0x2f3   :  { %1963 = vpow2.f32 %v1565_v59  ;;  %v1469_v44 = vpop.xlane.xlu1 %1468 }
 0x2f4   :  { %1965 = vpow2.f32 %v874_v8  ;;  %v1470_v6 = vsub.f32 %v2355_v60, %v1469_v44 }
 0x2f5   :  { %1967 = vpow2.f32 %v822_v40 }
 0x2f6   :  { %1969 = vpow2.f32 %v862_v19  ;;  %v1471_v8 = vmul.f32 1.442695, %v1470_v6 }
 0x2f7   :  { %1971 = vpow2.f32 %v939_v31 }
 0x2f8   :  { %1973 = vpow2.f32 %v895_v33 }
 0x2f9   :  { %1975 = vpow2.f32 %v1016_v29 }
 0x2fa   :  { %v2421_v11 = vpop.eup %1957  ;;  %1977 = vpow2.f32 %v1241_v38 }
 0x2fb   :  { %1372 = vrot.lane.b32.xlu1 %v2421_v11, %s2142_s17  ;;  %v2425_v12 = vpop.eup %1959  ;;  %1979 = vpow2.f32 %v1337_v41 }
 0x2fc   :  { %v2429_v55 = vpop.eup %1961  ;;  %1981 = vpow2.f32 %v1275_v53 }
 0x2fd   :  { %v2433_v13 = vpop.eup %1963  ;;  %1983 = vpow2.f32 %v1450_v57 }
 0x2fe   :  { %v2435_v14 = vpop.eup %1965  ;;  %1985 = vpow2.f32 %v1545_v63 }
 0x2ff   :  { %1436 = vrot.lane.b32.xlu1 %v2425_v12, %s2145_s20  ;;  %v2441_v15 = vpop.eup %1967  ;;  %1987 = vpow2.f32 %v1471_v8 }
 0x300   :  { %v2447_v21 = vpop.eup %1969 }
 0x301   :  { %v864_v23 = vsel %vm781_vm4, %v2447_v21, 0.0  ;;  %v2457_v34 = vpop.eup %1971 }
 0x302   :  { %v2461_v37 = vpop.eup %1973 }
 0x303   :  { %1532 = vrot.lane.b32.xlu1 %v2429_v55, %s2145_s20  ;;  %v2465_v10 = vpop.eup %1975 }
 0x304   :  { %v2473_v45 = vpop.eup %1977 }
 0x305   :  { %v1243_v47 = vsel %vm854_vm9, %v2473_v45, 0.0  ;;  %v2477_v48 = vpop.eup %1979 }
 0x306   :  { %v1339_v43 = vsel %vm854_vm9, %v2477_v48, 0.0  ;;  %v2488_v22 = vpop.eup %1981 }
 0x307   :  { %1568 = vrot.lane.b32.xlu1 %v2433_v13, %s2146_s21  ;;  %v2493_v0 = vpop.eup %1983 }
 0x308   :  { %877 = vrot.lane.b32.xlu0 %v2435_v14, %s2143_s18  ;;  %v2498_v59 = vpop.eup %1985 }
 0x309   :  { %v2501_v9 = vpop.eup %1987 }
 0x30c   :  { %825 = vrot.lane.b32.xlu0 %v2441_v15, %s2144_s19 }
 0x32b   :  { %865 = vadd.xlane.f32.xlu0 %v864_v23 }
 0x339   :  { %v982_v61 = vpop.permute.xlu0 %981 }
 0x33a   :  { %v960_v46 = vpop.permute.xlu1 %959  ;;  %v984_v16 = vsel %vm805_vm13, %v982_v61, 0.0 }
 0x33b   :  { %v962_v40 = vsel %vm781_vm4, %v960_v46, 0.0 }
 0x33e   :  { %v803_v51 = vpop.permute.xlu1 %802 }
 0x33f   :  { %v806_v60 = vsel %vm805_vm13, %v803_v51, 0.0 }
 0x341   :  { %942 = vrot.lane.b32.xlu0 %v2457_v34, %s2147_s22 }
 0x342   :  { %v1036_v50 = vpop.permute.xlu1 %1035 }
 0x343   :  { %v1038_v24 = vsel %vm781_vm4, %v1036_v50, 0.0 }
 0x345   :  { %898 = vrot.lane.b32.xlu0 %v2461_v37, %s2144_s19  ;;  %v1057_v1 = vpop.permute.xlu0 %1056 }
 0x346   :  { %v1059_v3 = vsel %vm805_vm13, %v1057_v1, 0.0 }
 0x349   :  { %1019 = vrot.lane.b32.xlu0 %v2465_v10, %s2147_s22 }
 0x353   :  { %v1258_v56 = vpop.permute.xlu1 %1257 }
 0x354   :  { %v1260_v46 = vsel %vm854_vm9, %v1258_v56, 0.0 }
 0x357   :  { %v1353_v2 = vpop.permute.xlu1 %1352 }
 0x368   :  { %1244 = vadd.xlane.f32.xlu0 %v1243_v47  ;;  %v1355_v47 = vsel %vm854_vm9, %v1353_v2, 0.0 }
 0x36c   :  { %1340 = vadd.xlane.f32.xlu0 %v1339_v43 }
 0x36d   :  { %v1373_v4 = vpop.permute.xlu1 %1372 }
 0x36e   :  { %v1375_v18 = vsel %vm854_vm9, %v1373_v4, 0.0 }
 0x371   :  { %v1437_v54 = vpop.permute.xlu1 %1436 }
 0x372   :  { %v1439_v36 = vsel %vm854_vm9, %v1437_v54, 0.0 }
 0x375   :  { %v1533_v19 = vpop.permute.xlu1 %1532 }
 0x376   :  { %v1535_v61 = vsel %vm854_vm9, %v1533_v19, 0.0 }
 0x379   :  { %v1569_v33 = vpop.permute.xlu1 %1568 }
 0x37a   :  { %v1571_v28 = vsel %vm854_vm9, %v1569_v33, 0.0 }
 0x37f   :  { %v2486_v5 = vpop.xlane.xlu0 %789 }
 0x382   :  { %1278 = vrot.lane.b32.xlu0 %v2488_v22, %s2142_s17 }
 0x383   :  { %v878_v62 = vpop.permute.xlu0 %877 }
 0x384   :  { %v880_v49 = vsel %vm805_vm13, %v878_v62, 0.0 }
 0x385   :  { %881 = vadd.xlane.f32.xlu1 %v880_v49 }
 0x386   :  { %1453 = vrot.lane.b32.xlu0 %v2493_v0, %s2148_s23 }
 0x387   :  { %v826_v23 = vpop.permute.xlu0 %825 }
 0x388   :  { %v828_v29 = vsel %vm781_vm4, %v826_v23, 0.0 }
 0x389   :  { %1440 = vadd.xlane.f32.xlu1 %v1439_v36 }
 0x38a   :  { %1548 = vrot.lane.b32.xlu0 %v2498_v59, %s2148_s23 }
 0x39a   :  { %1474 = vrot.lane.b32.xlu1 %v2501_v9, %s2146_s21 }
 0x3a9   :  { %963 = vadd.xlane.f32.xlu0 %v962_v40 }
 0x3ad   :  { %985 = vadd.xlane.f32.xlu0 %v984_v16 }
 0x3b1   :  { %807 = vadd.xlane.f32.xlu0 %v806_v60 }
 0x3b5   :  { %1039 = vadd.xlane.f32.xlu0 %v1038_v24 }
 0x3b8   :  { %v2509_v31 = vpop.xlane.xlu0 %865 }
 0x3b9   :  { %1060 = vadd.xlane.f32.xlu0 %v1059_v3 }
 0x3bc   :  { %v943_v7 = vpop.permute.xlu0 %942 }
 0x3bd   :  { %829 = vadd.xlane.f32.xlu0 %v828_v29  ;;  %v945_v39 = vsel %vm805_vm13, %v943_v7, 0.0 }
 0x3be   :  { %1572 = vadd.xlane.f32.xlu1 %v1571_v28 }
 0x3c0   :  { %v899_v38 = vpop.permute.xlu0 %898 }
 0x3c1   :  { %946 = vadd.xlane.f32.xlu0 %v945_v39  ;;  %v901_v41 = vsel %vm781_vm4, %v899_v38, 0.0  ;;  %vm1329_vm4 = vcmask 392192  }
 0x3c4   :  { %v1020_v42 = vpop.permute.xlu0 %1019 }
 0x3c5   :  { %902 = vadd.xlane.f32.xlu0 %v901_v41  ;;  %v1022_v44 = vsel %vm805_vm13, %v1020_v42, 0.0 }
 0x3c9   :  { %1023 = vadd.xlane.f32.xlu0 %v1022_v44 }
 0x3cd   :  { %1261 = vadd.xlane.f32.xlu0 %v1260_v46 }
 0x3d1   :  { %1356 = vadd.xlane.f32.xlu0 %v1355_v47 }
 0x3f5   :  { %v2519_v51 = vpop.xlane.xlu0 %1244 }
 0x3f9   :  { %v2521_v43 = vpop.xlane.xlu0 %1340 }
 0x3fd   :  { %v1279_v52 = vpop.permute.xlu0 %1278 }
 0x3fe   :  { %v1281_v50 = vsel %vm854_vm9, %v1279_v52, 0.0 }
 0x3ff   :  { %1282 = vadd.xlane.f32.xlu0 %v1281_v50 }
 0x401   :  { %v1454_v53 = vpop.permute.xlu0 %1453 }
 0x402   :  { %v1456_v56 = vsel %vm854_vm9, %v1454_v53, 0.0 }
 0x403   :  { %1376 = vadd.xlane.f32.xlu0 %v1375_v18 }
 0x405   :  { %v1549_v20 = vpop.permute.xlu0 %1548 }
 0x406   :  { %v1551_v57 = vsel %vm854_vm9, %v1549_v20, 0.0 }
 0x407   :  { %1552 = vadd.xlane.f32.xlu0 %v1551_v57 }
 0x40b   :  { %1457 = vadd.xlane.f32.xlu0 %v1456_v56 }
 0x40f   :  { %1536 = vadd.xlane.f32.xlu0 %v1535_v61 }
 0x412   :  { %v882_v63 = vpop.xlane.xlu1 %881 }
 0x416   :  { %v2528_v1 = vpop.xlane.xlu1 %1440 }
 0x41a   :  { %v1475_v2 = vpop.permute.xlu1 %1474 }
 0x41b   :  { %v1477_v62 = vsel %vm854_vm9, %v1475_v2, 0.0 }
 0x41c   :  { %1478 = vadd.xlane.f32.xlu0 %v1477_v62 }
 0x436   :  { %v964_v49 = vpop.xlane.xlu0 %963 }
 0x437   :  { %1989 = vrcp.f32 %v964_v49 }
 0x43a   :  { %v986_v4 = vpop.xlane.xlu0 %985 }
 0x43b   :  { %1991 = vrcp.f32 %v986_v4 }
 0x43e   :  { %v808_v54 = vpop.xlane.xlu0 %807 }
 0x43f   :  { %1993 = vrcp.f32 %v808_v54 }
 0x441   :  { %v1990_v6 = vpop.eup %1989 }
 0x442   :  { %v1040_v36 = vpop.xlane.xlu0 %1039  ;;  %v966_v8 = vmul.f32 %v1990_v6, %v2368_v27 }
 0x443   :  { %1995 = vrcp.f32 %v1040_v36 }
 0x444   :  { %v968_v40 = vrot.slane %v966_v8, 4 }
 0x445   :  { %v1992_v16 = vpop.eup %1991 }
 0x446   :  { %v1061_v60 = vpop.xlane.xlu0 %1060  ;;  %969 = vrot.lane.b32.xlu0 %v968_v40, %s2143_s18  ;;  %v988_v19 = vmul.f32 %v1992_v16, %v2366_v25 }
 0x447   :  { %1997 = vrcp.f32 %v1061_v60 }
 0x448   :  { %990 = vrot.lane.b32.xlu1 %v988_v19, %s2144_s19  ;;  %1999 = vrcp.f32 %v882_v63 }
 0x449   :  { %v1994_v23 = vpop.eup %1993 }
 0x44a   :  { %v830_v24 = vpop.xlane.xlu0 %829  ;;  %v810_v3 = vmul.f32 %v1994_v23, %v2375_v30 }
 0x44b   :  { %2001 = vrcp.f32 %v830_v24 }
 0x44c   :  { %v812_v33 = vrot.slane %v810_v3, 4 }
 0x44d   :  { %v1996_v7 = vpop.eup %1995 }
 0x44e   :  { %v947_v27 = vpop.xlane.xlu0 %946  ;;  %813 = vrot.lane.b32.xlu0 %v812_v33, %s2143_s18  ;;  %v1042_v29 = vmul.f32 %v1996_v7, %v2379_v32 }
 0x450   :  { %v1044_v28 = vrot.slane %v1042_v29, 4 }
 0x451   :  { %v1998_v38 = vpop.eup %1997 }
 0x452   :  { %v903_v39 = vpop.xlane.xlu0 %902  ;;  %1045 = vrot.lane.b32.xlu0 %v1044_v28, %s2143_s18  ;;  %v1063_v25 = vmul.f32 %v1998_v38, %v2383_v35  ;;  %v2000_v41 = vpop.eup %1999 }
 0x453   :  { %2003 = vrcp.f32 %v903_v39  ;;  %v884_v46 = vmul.f32 %v2000_v41, %v2435_v14 }
 0x454   :  { %1065 = vrot.lane.b32.xlu1 %v1063_v25, %s2144_s19 }
 0x455   :  { %v2002_v30 = vpop.eup %2001  ;;  %v886_v47 = vrot.slane %v884_v46, 4 }
 0x456   :  { %v1024_v42 = vpop.xlane.xlu0 %1023  ;;  %v832_v44 = vmul.f32 %v2002_v30, %v2441_v15 }
 0x458   :  { %834 = vrot.lane.b32.xlu1 %v832_v44, %s2144_s19 }
 0x45a   :  { %v1262_v32 = vpop.xlane.xlu0 %1261 }
 0x45b   :  { %2005 = vrcp.f32 %v1262_v32 }
 0x45c   :  { %887 = vrot.lane.b32.xlu1 %v886_v47, %s2143_s18 }
 0x45d   :  { %v2004_v52 = vpop.eup %2003 }
 0x45e   :  { %v1357_v50 = vpop.xlane.xlu0 %1356  ;;  %v905_v35 = vmul.f32 %v2004_v52, %v2461_v37 }
 0x45f   :  { %2007 = vrcp.f32 %v1357_v50 }
 0x460   :  { %907 = vrot.lane.b32.xlu0 %v905_v35, %s2144_s19 }
 0x465   :  { %v2006_v53 = vpop.eup %2005 }
 0x466   :  { %v1264_v18 = vmul.f32 %v2006_v53, %v2397_v17 }
 0x468   :  { %1266 = vrot.lane.b32.xlu0 %v1264_v18, %s2144_s19 }
 0x469   :  { %v2008_v14 = vpop.eup %2007 }
 0x46a   :  { %v1359_v15 = vmul.f32 %v2008_v14, %v2403_v26 }
 0x46c   :  { %1361 = vrot.lane.b32.xlu0 %v1359_v15, %s2144_s19 }
 0x48c   :  { %v1283_v20 = vpop.xlane.xlu0 %1282 }
 0x48d   :  { %2009 = vrcp.f32 %v1283_v20 }
 0x490   :  { %v1377_v57 = vpop.xlane.xlu0 %1376 }
 0x491   :  { %2011 = vrcp.f32 %v1377_v57 }
 0x494   :  { %v1553_v56 = vpop.xlane.xlu0 %1552 }
 0x497   :  { %v2010_v61 = vpop.eup %2009 }
 0x498   :  { %v1458_v37 = vpop.xlane.xlu0 %1457  ;;  %v1285_v63 = vmul.f32 %v2010_v61, %v2488_v22  ;;  %v1573_v22 = vpop.xlane.xlu1 %1572 }
 0x499   :  { %2013 = vrcp.f32 %v1458_v37 }
 0x49a   :  { %1287 = vrot.lane.b32.xlu1 %v1285_v63, %s2142_s17  ;;  %2015 = vrcp.f32 %v1553_v56 }
 0x49b   :  { %v2012_v17 = vpop.eup %2011  ;;  %2017 = vrcp.f32 %v947_v27 }
 0x49c   :  { %v1379_v2 = vmul.f32 %v2012_v17, %v2421_v11  ;;  %v2556_v4 = vpop.xlane.xlu0 %1536 }
 0x49e   :  { %1381 = vrot.lane.b32.xlu1 %v1379_v2, %s2142_s17 }
 0x4a3   :  { %v2014_v26 = vpop.eup %2013 }
 0x4a4   :  { %v1460_v62 = vmul.f32 %v2014_v26, %v2493_v0  ;;  %v2016_v49 = vpop.eup %2015 }
 0x4a5   :  { %v1555_v54 = vmul.f32 %v2016_v49, %v2498_v59  ;;  %v2018_v11 = vpop.eup %2017 }
 0x4a6   :  { %1462 = vrot.lane.b32.xlu0 %v1460_v62, %s2144_s19  ;;  %v949_v0 = vmul.f32 %v2018_v11, %v2457_v34 }
 0x4a9   :  { %v1479_v6 = vpop.xlane.xlu0 %1478 }
 0x4aa   :  { %2019 = vrcp.f32 %v1479_v6  ;;  %1557 = vrot.lane.b32.xlu0 %v1555_v54, %s2144_s19 }
 0x4ab   :  { %2021 = vrcp.f32 %v1573_v22 }
 0x4ac   :  { %2023 = vrcp.f32 %v1024_v42 }
 0x4ad   :  { %2025 = vrcp.f32 %v2486_v5 }
 0x4ae   :  { %2027 = vrcp.f32 %v2509_v31 }
 0x4af   :  { %2029 = vrcp.f32 %v2519_v51 }
 0x4b0   :  { %2031 = vrcp.f32 %v2521_v43 }
 0x4b1   :  { %2033 = vrcp.f32 %v2528_v1 }
 0x4b2   :  { %2035 = vrcp.f32 %v2556_v4 }
 0x4b4   :  { %v2020_v36 = vpop.eup %2019 }
 0x4b5   :  { %v1481_v8 = vmul.f32 %v2020_v36, %v2501_v9  ;;  %v2022_v40 = vpop.eup %2021 }
 0x4b6   :  { %v1575_v59 = vmul.f32 %v2022_v40, %v2433_v13  ;;  %v2024_v3 = vpop.eup %2023 }
 0x4b7   :  { %1483 = vrot.lane.b32.xlu1 %v1481_v8, %s2142_s17  ;;  %v1026_v34 = vmul.f32 %v2024_v3, %v2465_v10  ;;  %v2026_v5 = vpop.eup %2025 }
 0x4b8   :  { %v970_v16 = vpop.permute.xlu0 %969  ;;  %v792_v28 = vmul.f32 %v2026_v5, %v2413_v58  ;;  %v2028_v46 = vpop.eup %2027 }
 0x4b9   :  { %v972_v60 = vadd.f32 %v970_v16, %v949_v0  ;;  %v868_v31 = vmul.f32 %v2028_v46, %v2447_v21  ;;  %v2030_v20 = vpop.eup %2029 }
 0x4ba   :  { %v991_v19 = vpop.permute.xlu1 %990  ;;  %v1247_v56 = vmul.f32 %v2030_v20, %v2473_v45  ;;  %v2032_v61 = vpop.eup %2031 }
 0x4bb   :  { %v993_v23 = vadd.f32 %v991_v19, %v972_v60  ;;  %1577 = vrot.lane.b32.xlu1 %v1575_v59, %s2142_s17  ;;  %v1343_v2 = vmul.f32 %v2032_v61, %v2477_v48  ;;  %v2034_v1 = vpop.eup %2033 }
 0x4bc   :  { %v2036_v19 = vpop.eup %2035  ;;  %v1443_v4 = vmul.f32 %v2034_v1, %v2425_v12 }
 0x4bd   :  { %v2567_v24 = vmul.f32 0.33333334, %v993_v23 }
 0x4bf   :  { %996 = vrot.lane.b32.xlu0 %v2567_v24, %s2147_s22  ;;  %v999_v9 = vrot.slane %v2567_v24, 1  ;;  %v1003_v13 = vrot.slane %v2567_v24, 2 }
 0x4c0   :  { %v814_v33 = vpop.permute.xlu0 %813 }
 0x4c1   :  { %1000 = vrot.lane.b32.xlu1 %v999_v9, %s2144_s19  ;;  %v816_v39 = vadd.f32 %v814_v33, %v792_v28 }
 0x4c4   :  { %v1046_v7 = vpop.permute.xlu0 %1045 }
 0x4c5   :  { %v1048_v27 = vadd.f32 %v1046_v7, %v1026_v34  ;;  %1004 = vrot.lane.b32.xlu1 %v1003_v13, %s2143_s18  ;;  %v1539_v34 = vmul.f32 %v2036_v19, %v2429_v55 }
 0x4c6   :  { %v1066_v29 = vpop.permute.xlu1 %1065 }
 0x4c7   :  { %v1068_v38 = vadd.f32 %v1066_v29, %v1048_v27 }
 0x4c9   :  { %v2578_v25 = vmul.f32 0.33333334, %v1068_v38 }
 0x4ca   :  { %v835_v41 = vpop.permute.xlu1 %834 }
 0x4cb   :  { %v837_v30 = vadd.f32 %v835_v41, %v816_v39  ;;  %1071 = vrot.lane.b32.xlu0 %v2578_v25, %s2147_s22  ;;  %v1074_v35 = vrot.slane %v2578_v25, 1  ;;  %v1078_v18 = vrot.slane %v2578_v25, 2 }
 0x4cd   :  { %v2582_v10 = vmul.f32 0.33333334, %v837_v30 }
 0x4ce   :  { %v888_v58 = vpop.permute.xlu1 %887 }
 0x4cf   :  { %v844_v42 = vrot.slane %v2582_v10, 2  ;;  %v840_v44 = vrot.slane %v2582_v10, 1  ;;  %v848_v32 = vrot.slane %v2582_v10, 3  ;;  %v890_v52 = vadd.f32 %v888_v58, %v868_v31 }
 0x4d1   :  { %845 = vrot.lane.b32.xlu1 %v844_v42, %s2135_s26  ;;  %841 = vrot.lane.b32.xlu0 %v840_v44, %s2149_s24  ;;  %v1007_v44 = vrot.slane %v2567_v24, 3 }
 0x4d2   :  { %v908_v47 = vpop.permute.xlu0 %907 }
 0x4d3   :  { %v910_v50 = vadd.f32 %v908_v47, %v890_v52 }
 0x4d5   :  { %849 = vrot.lane.b32.xlu1 %v848_v32, %s2150_s25  ;;  %v2591_v53 = vmul.f32 0.33333334, %v910_v50 }
 0x4d7   :  { %v913_v14 = vrot.slane %v2591_v53, 1  ;;  %v917_v21 = vrot.slane %v2591_v53, 2  ;;  %v921_v15 = vrot.slane %v2591_v53, 3 }
 0x4d9   :  { %1075 = vrot.lane.b32.xlu1 %v1074_v35, %s2144_s19 }
 0x4da   :  { %v1267_v57 = vpop.permute.xlu0 %1266 }
 0x4db   :  { %v1269_v37 = vadd.f32 %v1267_v57, %v1247_v56 }
 0x4dd   :  { %1079 = vrot.lane.b32.xlu1 %v1078_v18, %s2143_s18 }
 0x4de   :  { %v1362_v63 = vpop.permute.xlu0 %1361 }
 0x4df   :  { %v1364_v62 = vadd.f32 %v1362_v63, %v1343_v2 }
 0x4e1   :  { %914 = vrot.lane.b32.xlu1 %v913_v14, %s2149_s24 }
 0x4e5   :  { %918 = vrot.lane.b32.xlu1 %v917_v21, %s2135_s26 }
 0x4e9   :  { %922 = vrot.lane.b32.xlu1 %v921_v15, %s2150_s25 }
 0x50c   :  { %v1288_v17 = vpop.permute.xlu1 %1287 }
 0x50d   :  { %v1290_v26 = vadd.f32 %v1288_v17, %v1269_v37 }
 0x50f   :  { %v2603_v49 = vmul.f32 0.33333334, %v1290_v26  ;;  %v1082_v26 = vrot.slane %v2578_v25, 3 }
 0x510   :  { %v1382_v54 = vpop.permute.xlu1 %1381 }
 0x511   :  { %v1384_v22 = vadd.f32 %v1382_v54, %v1364_v62  ;;  %v1297_v51 = vrot.slane %v2603_v49, 2  ;;  %v1293_v43 = vrot.slane %v2603_v49, 1  ;;  %v1301_v6 = vrot.slane %v2603_v49, 3 }
 0x512   :  { %v1317_v48 = vrot.slane %v2603_v49, 7  ;;  %v1305_v11 = vrot.slane %v2603_v49, 4  ;;  %v1309_v8 = vrot.slane %v2603_v49, 5  ;;  %v1313_v0 = vrot.slane %v2603_v49, 6 }
 0x513   :  { %1298 = vrot.lane.b32.xlu1 %v1297_v51, %s2138_s13  ;;  %1294 = vrot.lane.b32.xlu0 %v1293_v43, %s2135_s26  ;;  %v2609_v45 = vmul.f32 0.33333334, %v1384_v22 }
 0x515   :  { %v1395_v36 = vrot.slane %v2609_v45, 3  ;;  %v1403_v40 = vrot.slane %v2609_v45, 5  ;;  %v1411_v16 = vrot.slane %v2609_v45, 7  ;;  %v1387_v59 = vrot.slane %v2609_v45, 1 }
 0x516   :  { %v1391_v3 = vrot.slane %v2609_v45, 2  ;;  %v1399_v27 = vrot.slane %v2609_v45, 4  ;;  %v1407_v38 = vrot.slane %v2609_v45, 6 }
 0x517   :  { %1302 = vrot.lane.b32.xlu1 %v1301_v6, %s2151_s27  ;;  %1318 = vrot.lane.b32.xlu0 %v1317_v48, %s2152_s28 }
 0x518   :  { %v1463_v60 = vpop.permute.xlu0 %1462 }
 0x519   :  { %v1465_v33 = vadd.f32 %v1463_v60, %v1443_v4 }
 0x51b   :  { %1306 = vrot.lane.b32.xlu1 %v1305_v11, %s2153_s29  ;;  %1396 = vrot.lane.b32.xlu0 %v1395_v36, %s2151_s27 }
 0x51c   :  { %v1558_v23 = vpop.permute.xlu0 %1557 }
 0x51d   :  { %v1560_v13 = vadd.f32 %v1558_v23, %v1539_v34 }
 0x51f   :  { %1310 = vrot.lane.b32.xlu1 %v1309_v8, %s2154_s30  ;;  %1404 = vrot.lane.b32.xlu0 %v1403_v40, %s2154_s30 }
 0x523   :  { %1314 = vrot.lane.b32.xlu1 %v1313_v0, %s2155_s5  ;;  %1412 = vrot.lane.b32.xlu0 %v1411_v16, %s2152_s28 }
 0x527   :  { %1388 = vrot.lane.b32.xlu1 %v1387_v59, %s2135_s26 }
 0x529   :  { %v1484_v9 = vpop.permute.xlu1 %1483 }
 0x52a   :  { %v1486_v5 = vadd.f32 %v1484_v9, %v1465_v33 }
 0x52b   :  { %1392 = vrot.lane.b32.xlu1 %v1391_v3, %s2138_s13 }
 0x52c   :  { %v2632_v28 = vmul.f32 0.33333334, %v1486_v5 }
 0x52d   :  { %v1578_v7 = vpop.permute.xlu1 %1577 }
 0x52e   :  { %v1580_v29 = vadd.f32 %v1578_v7, %v1560_v13  ;;  %v1492_v30 = vrot.slane %v2632_v28, 1  ;;  %v1502_v58 = vrot.slane %v2632_v28, 4  ;;  %v1496_v31 = vrot.slane %v2632_v28, 2 }
 0x52f   :  { %1400 = vrot.lane.b32.xlu1 %v1399_v27, %s2153_s29  ;;  %v1510_v47 = vrot.slane %v2632_v28, 6  ;;  %v1506_v52 = vrot.slane %v2632_v28, 5  ;;  %v1514_v35 = vrot.slane %v2632_v28, 7 }
 0x530   :  { %v2634_v12 = vmul.f32 0.33333334, %v1580_v29 }
 0x531   :  { %v997_v55 = vpop.permute.xlu0 %996 }
 0x532   :  { %1583 = vrot.lane.b32.xlu0 %v2634_v12, %s2145_s20  ;;  %v1590_v50 = vrot.slane %v2634_v12, 2  ;;  %v1600_v15 = vrot.slane %v2634_v12, 5  ;;  %v1586_v57 = vrot.slane %v2634_v12, 1  ;;  %v1596_v37 = vrot.slane %v2634_v12, 4 }
 0x533   :  { %1408 = vrot.lane.b32.xlu1 %v1407_v38, %s2155_s5  ;;  %v1001_v39 = vpop.permute.xlu1 %1000  ;;  %v1608_v25 = vrot.slane %v2634_v12, 7 }
 0x534   :  { %v1009_v41 = vsel %vm852_vm14, %v997_v55, %v1001_v39 }
 0x536   :  { %1493 = vrot.lane.b32.xlu0 %v1492_v30, %s2142_s17 }
 0x537   :  { %1489 = vrot.lane.b32.xlu1 %v2632_v28, %s2145_s20  ;;  %v1005_v42 = vpop.permute.xlu1 %1004 }
 0x538   :  { %v1010_v46 = vsel %vm854_vm9, %v1009_v41, %v1005_v42 }
 0x539   :  { %v2649_v32 = vsel %vm856_vm15, %v1010_v46, %v1007_v44 }
 0x53a   :  { %1503 = vrot.lane.b32.xlu0 %v1502_v58, %s2135_s26 }
 0x53b   :  { %1497 = vrot.lane.b32.xlu1 %v1496_v31, %s2144_s19 }
 0x53d   :  { %v1072_v24 = vpop.permute.xlu0 %1071 }
 0x53e   :  { %1511 = vrot.lane.b32.xlu0 %v1510_v47, %s2151_s27  ;;  %v1500_v47 = vrot.slane %v2632_v28, 3 }
 0x53f   :  { %1507 = vrot.lane.b32.xlu1 %v1506_v52, %s2138_s13 }
 0x542   :  { %1591 = vrot.lane.b32.xlu0 %v1590_v50, %s2144_s19 }
 0x543   :  { %v842_v18 = vpop.permute.xlu0 %841  ;;  %1515 = vrot.lane.b32.xlu1 %v1514_v35, %s2153_s29  ;;  %v846_v14 = vpop.permute.xlu1 %845 }
 0x544   :  { %v853_v21 = vsel %vm852_vm14, %v2582_v10, %v842_v18  ;;  %v1604_v10 = vrot.slane %v2634_v12, 6 }
 0x545   :  { %v855_v20 = vsel %vm854_vm9, %v853_v21, %v846_v14 }
 0x546   :  { %1601 = vrot.lane.b32.xlu0 %v1600_v15, %s2138_s13 }
 0x547   :  { %1587 = vrot.lane.b32.xlu1 %v1586_v57, %s2142_s17  ;;  %v850_v56 = vpop.permute.xlu1 %849 }
 0x548   :  { %v2669_v61 = vsel %vm856_vm15, %v855_v20, %v850_v56 }
 0x54b   :  { %1597 = vrot.lane.b32.xlu1 %v1596_v37, %s2135_s26  ;;  %v1076_v63 = vpop.permute.xlu1 %1075  ;;  %s2156_s26 = smov 64  }
 0x54c   :  { %v1084_v17 = vsel %vm852_vm14, %v1072_v24, %v1076_v63 }
 0x54f   :  { %1605 = vrot.lane.b32.xlu1 %v1604_v10, %s2151_s27  ;;  %v1080_v2 = vpop.permute.xlu1 %1079 }
 0x550   :  { %v1085_v62 = vsel %vm854_vm9, %v1084_v17, %v1080_v2 }
 0x551   :  { %v1086_v54 = vsel %vm856_vm15, %v1085_v62, %v1082_v26  ;;  %v1594_v26 = vrot.slane %v2634_v12, 3 }
 0x553   :  { %1088 = vrot.lane.b32.xlu1 %v1086_v54, %s2138_s13  ;;  %v915_v22 = vpop.permute.xlu1 %914 }
 0x554   :  { %v925_v43 = vsel %vm852_vm14, %v2591_v53, %v915_v22 }
 0x557   :  { %v919_v51 = vpop.permute.xlu1 %918 }
 0x558   :  { %v926_v6 = vsel %vm854_vm9, %v925_v43, %v919_v51 }
 0x55b   :  { %v923_v48 = vpop.permute.xlu1 %922 }
 0x55c   :  { %v927_v11 = vsel %vm856_vm15, %v926_v6, %v923_v48 }
 0x55d   :  { %929 = vrot.lane.b32.xlu0 %v927_v11, %s2138_s13 }
 0x561   :  { %1609 = vrot.lane.b32.xlu0 %v1608_v25, %s2153_s29 }
 0x585   :  { %v1295_v36 = vpop.permute.xlu0 %1294  ;;  %v1299_v8 = vpop.permute.xlu1 %1298 }
 0x586   :  { %v1321_v40 = vsel %vm854_vm9, %v2603_v49, %v1295_v36 }
 0x587   :  { %v1322_v0 = vsel %vm932_vm0, %v1321_v40, %v1299_v8 }
 0x589   :  { %v1303_v53 = vpop.permute.xlu1 %1302  ;;  %v1319_v1 = vpop.permute.xlu0 %1318 }
 0x58a   :  { %v1324_v16 = vsel %vm1323_vm1, %v1322_v0, %v1303_v53 }
 0x58d   :  { %v1307_v60 = vpop.permute.xlu1 %1306  ;;  %v1397_v23 = vpop.permute.xlu0 %1396 }
 0x58e   :  { %v1326_v59 = vsel %vm1325_vm2, %v1324_v16, %v1307_v60 }
 0x591   :  { %v1311_v19 = vpop.permute.xlu1 %1310  ;;  %v1405_v34 = vpop.permute.xlu0 %1404 }
 0x592   :  { %v1328_v4 = vsel %vm1327_vm3, %v1326_v59, %v1311_v19 }
 0x595   :  { %v1315_v9 = vpop.permute.xlu1 %1314  ;;  %v1413_v27 = vpop.permute.xlu0 %1412 }
 0x596   :  { %v1330_v49 = vsel %vm1329_vm4, %v1328_v4, %v1315_v9 }
 0x597   :  { %v2695_v3 = vsel %vm1331_vm5, %v1330_v49, %v1319_v1 }
 0x599   :  { %v1389_v33 = vpop.permute.xlu1 %1388 }
 0x59a   :  { %v1415_v13 = vsel %vm854_vm9, %v2609_v45, %v1389_v33 }
 0x59d   :  { %v1393_v5 = vpop.permute.xlu1 %1392 }
 0x59e   :  { %v1416_v7 = vsel %vm932_vm0, %v1415_v13, %v1393_v5 }
 0x59f   :  { %v1417_v29 = vsel %vm1323_vm1, %v1416_v7, %v1397_v23 }
 0x5a1   :  { %v1401_v38 = vpop.permute.xlu1 %1400 }
 0x5a2   :  { %v1418_v55 = vsel %vm1325_vm2, %v1417_v29, %v1401_v38 }
 0x5a3   :  { %v1419_v41 = vsel %vm1327_vm3, %v1418_v55, %v1405_v34 }
 0x5a4   :  { %v1584_v39 = vpop.permute.xlu0 %1583 }
 0x5a5   :  { %v1409_v30 = vpop.permute.xlu1 %1408 }
 0x5a6   :  { %v1420_v42 = vsel %vm1329_vm4, %v1419_v41, %v1409_v30 }
 0x5a7   :  { %v1421_v44 = vsel %vm1331_vm5, %v1420_v42, %v1413_v27 }
 0x5a8   :  { %v1494_v46 = vpop.permute.xlu0 %1493  ;;  %1423 = vrot.lane.b32.xlu1 %v1421_v44, %s2156_s26 }
 0x5a9   :  { %v1490_v45 = vpop.permute.xlu1 %1489 }
 0x5aa   :  { %v1518_v58 = vsel %vm854_vm9, %v1490_v45, %v1494_v46 }
 0x5ac   :  { %v1504_v31 = vpop.permute.xlu0 %1503 }
 0x5ad   :  { %v1498_v52 = vpop.permute.xlu1 %1497 }
 0x5ae   :  { %v1519_v24 = vsel %vm932_vm0, %v1518_v58, %v1498_v52 }
 0x5af   :  { %v1520_v50 = vsel %vm1323_vm1, %v1519_v24, %v1500_v47 }
 0x5b0   :  { %v1521_v35 = vsel %vm1325_vm2, %v1520_v50, %v1504_v31  ;;  %v1512_v14 = vpop.permute.xlu0 %1511 }
 0x5b1   :  { %v1508_v18 = vpop.permute.xlu1 %1507 }
 0x5b2   :  { %v1522_v21 = vsel %vm1327_vm3, %v1521_v35, %v1508_v18 }
 0x5b3   :  { %v1523_v15 = vsel %vm1329_vm4, %v1522_v21, %v1512_v14 }
 0x5b4   :  { %v1592_v28 = vpop.permute.xlu0 %1591 }
 0x5b5   :  { %v1516_v20 = vpop.permute.xlu1 %1515 }
 0x5b6   :  { %v1524_v57 = vsel %vm1331_vm5, %v1523_v15, %v1516_v20 }
 0x5b8   :  { %v1602_v62 = vpop.permute.xlu0 %1601 }
 0x5b9   :  { %v1588_v56 = vpop.permute.xlu1 %1587 }
 0x5ba   :  { %v1612_v10 = vsel %vm854_vm9, %v1584_v39, %v1588_v56 }
 0x5bb   :  { %v1613_v17 = vsel %vm932_vm0, %v1612_v10, %v1592_v28 }
 0x5bc   :  { %v1614_v54 = vsel %vm1323_vm1, %v1613_v17, %v1594_v26 }
 0x5bd   :  { %v1598_v37 = vpop.permute.xlu1 %1597 }
 0x5be   :  { %v1615_v51 = vsel %vm1325_vm2, %v1614_v54, %v1598_v37 }
 0x5bf   :  { %v1616_v11 = vsel %vm1327_vm3, %v1615_v51, %v1602_v62 }
 0x5c1   :  { %v1606_v63 = vpop.permute.xlu1 %1605 }
 0x5c2   :  { %v1617_v25 = vsel %vm1329_vm4, %v1616_v11, %v1606_v63 }
 0x5c5   :  { %v1089_v2 = vpop.permute.xlu1 %1088 }
 0x5c6   :  { %v1091_v22 = vsel %vm932_vm0, %v2649_v32, %v1089_v2 }
 0x5c7   :  { %v1093_v43 = vrot.slane %v1091_v22, 3 }
 0x5cf   :  { %v930_v6 = vpop.permute.xlu0 %929 }
 0x5d0   :  { %v933_v48 = vsel %vm932_vm0, %v2669_v61, %v930_v6 }
 0x5d1   :  { %v1096_v12 = vsel %vm1095_vm6, %v933_v48, %v1093_v43 }
 0x5d2   :  { %1098 = vst.msk [vmem:[#allocation7] sm:$0x3] %vm1097_vm7, %v1096_v12 }
 0x5d3   :  { %v1610_v32 = vpop.permute.xlu0 %1609 }
 0x5d4   :  { %2092 = shalt.err (!%p2089_p6)
}
 0x5d5   :  { %s2093_s11 = scalar_lea.hbm %s2757_s3, 32 }
 0x5d6   :  { %p2094_p7 = scmp.ne.s32.totalorder %s2757_s3, %s2093_s11  ;;  %p2097_p8 = scmp.lt.u32.totalorder %s2093_s11, %s2757_s3 }
 0x5d8   :  { %p2099_p9 = pnand %p2097_p8, %p2094_p7 }
 0x5da   :  { %2102 = shalt.err (!%p2099_p9)
}
 0x5db   :  { %1638 = dma.vmem_to_hbm [thread:$0]  %s1636_s7, 32, %s2757_s3, [#allocation4]   ;;  %v1618_v61 = vsel %vm1331_vm5, %v1617_v25, %v1610_v32  ;;  %vm1426_vm8 = vcmask 523264  }
 0x5dc   :  { %1620 = vrot.lane.b32.xlu1 %v1618_v61, %s2156_s26  ;;  %s2158_s16 = smov [#allocation8]  }
 0x5dd   :  { %s1645_s2 = sshll.u32 %s2158_s16, 4  ;;  %s1646_s2 = int_to_ptr.vmem [resolvable:$true] %s1645_s2 }
 0x5de   :  { %s2103_s17 = scalar_lea.vmem %s1646_s2, 32  ;;  %p2108_p11 = scmp.lt.s32.totalorder %s1646_s2, %s1646_s2 }
 0x5df   :  { %p2104_p10 = scmp.ne.s32.totalorder %s1646_s2, %s2103_s17  ;;  %p2109_p12 = scmp.lt.s32.totalorder %s2103_s17, %s2103_s17 }
 0x5e1   :  { %p2110_p13 = por %p2109_p12, %p2108_p11 }
 0x5e3   :  { %p2111_p0 = pnand %p2110_p13, %p2104_p10 }
 0x61a   :  { %v1424_v36 = vpop.permute.xlu1 %1423 }
 0x61b   :  { %v1427_v53 = vsel %vm1426_vm8, %v2695_v3, %v1424_v36 }
 0x64e   :  { %v1621_v8 = vpop.permute.xlu1 %1620 }
 0x64f   :  { %v1623_v40 = vsel %vm1426_vm8, %v1524_v57, %v1621_v8 }
 0x650   :  { %v1625_v0 = vrot.slane %v1623_v40, 7 }
 0x652   :  { %v1627_v16 = vsel %vm1095_vm6, %v1427_v53, %v1625_v0 }
 0x653   :  { %1628 = vst [vmem:[#allocation8] sm:$0x3] %v1627_v16 }
 0x654   :  { %2114 = shalt.err (!%p2111_p0)
}
 0x655   :  { %s2115_s19 = scalar_lea.hbm %s2758_s4, 32 }
 0x656   :  { %p2116_p1 = scmp.ne.s32.totalorder %s2758_s4, %s2115_s19  ;;  %p2119_p2 = scmp.lt.u32.totalorder %s2115_s19, %s2758_s4 }
 0x658   :  { %p2121_p3 = pnand %p2119_p2, %p2116_p1 }
 0x65a   :  { %2124 = shalt.err (!%p2121_p3)
}
 0x65b   :  { %1648 = dma.vmem_to_hbm [thread:$0]  %s1646_s2, 32, %s2758_s4, [#allocation9]  }
 0x65c   :  { %2129 = dma.done.wait [#allocation4], 32  }
 0x65d   :  { %2130 = vsyncadd [#allocation4], 4294967264 }
 0x65e   :  { %2131 = dma.done.wait [#allocation9], 32  }
 0x65f   :  { %2132 = vsyncadd [#allocation9], 4294967264 }
 0x660   :  { %1655 = vsyncpa [#allocation3], 1 }
 0x661   :  { %1656 = vsyncpa [#allocation6], 1 }
 0x662   :  { %1657 = vsyncpa [#allocation4], 1 }
 0x663   :  { %1658 = vsyncpa [#allocation9], 1 }

</bundles_post_ra>
